<compile_context>
chip_gen: v6e
topology: v6e:2x2x1
jax: 0.10.0
libtpu: 0.0.40
codegen_flags: <defaults>
</compile_context>

<pallas_src>
import functools

import jax
import jax.numpy as jnp
from jax.experimental import pallas as pl
from jax.experimental.pallas import tpu as pltpu


LN_EPS = 1e-5


def _encoder_kernel(x_ref, w1_ref, b1_ref, w2_ref, b2_ref, w3_ref, b3_ref,
                    g_ref, beta_ref, o_ref):
    # Each grid step handles a (tm, 768) row slab of x.  Matmuls run on the
    # MXU with bf16 inputs / f32 accumulation; the epilogue stays in f32.
    x = x_ref[...].astype(jnp.bfloat16)   # no-op when x is already bf16

    # fc1 + relu   (768 -> 384)
    h1 = jnp.dot(x, w1_ref[...], preferred_element_type=jnp.float32)
    h1 = jnp.maximum(h1 + b1_ref[...], 0.0)

    # fc2 + relu   (384 -> 128)
    h2 = jnp.dot(h1.astype(jnp.bfloat16), w2_ref[...],
                 preferred_element_type=jnp.float32)
    h2 = jnp.maximum(h2 + b2_ref[...], 0.0)

    # (dropout = identity) fc3   (128 -> 128)
    h3 = jnp.dot(h2.astype(jnp.bfloat16), w3_ref[...],
                 preferred_element_type=jnp.float32)
    h3 = h3 + b3_ref[...]

    # (dropout = identity) LayerNorm over last dim (128), f32 statistics.
    mean = jnp.mean(h3, axis=-1, keepdims=True)
    centered = h3 - mean
    var = jnp.mean(centered * centered, axis=-1, keepdims=True)
    inv = jax.lax.rsqrt(var + LN_EPS)
    y = centered * inv * g_ref[...] + beta_ref[...]

    o_ref[...] = y.astype(o_ref.dtype)


def _round_up(v, m):
    return ((v + m - 1) // m) * m


@functools.partial(jax.jit, static_argnames=("tm", "out_dtype"))
def sp_jscc_encoder(x, params, tm=512, out_dtype=None):
    """x: [N, 768] (bf16 preferred, f32 accepted).  Returns [N, 128]."""
    n, d_in = x.shape
    assert d_in == 768, "Sp_JSCC_Encoder expects 768 input features"
    if out_dtype is None:
        out_dtype = x.dtype

    # Cap the row tile so the grid has >= 2 steps whenever N allows it (keeps
    # v7x's second TensorCore busy on small batches); keep it a multiple of 16
    # (bf16 sublane tile) and >= 16.
    tm_eff = min(tm, max(16, _round_up(pl.cdiv(n, 2), 16)))
    n_blocks = pl.cdiv(n, tm_eff)   # partial edge block is masked by Pallas

    w1, b1 = params["w1"], params["b1"]        # [768,384] bf16, [1,384] f32
    w2, b2 = params["w2"], params["b2"]        # [384,128] bf16, [1,128] f32
    w3, b3 = params["w3"], params["b3"]        # [128,128] bf16, [1,128] f32
    g, beta = params["gamma"], params["beta"]  # [1,128] f32, [1,128] f32

    # Constant operands: same block every grid step (index_map -> (0, 0)), so
    # the pipeline does not re-fetch them across steps.
    full = lambda shape: pl.BlockSpec(shape, lambda i: (0, 0))

    return pl.pallas_call(
        _encoder_kernel,
        out_shape=jax.ShapeDtypeStruct((n, 128), out_dtype),
        grid_spec=pl.GridSpec(
            grid=(n_blocks,),
            in_specs=[
                pl.BlockSpec((tm_eff, 768), lambda i: (i, 0)),   # x row slab
                full((768, 384)), full((1, 384)),                # fc1
                full((384, 128)), full((1, 128)),                # fc2
                full((128, 128)), full((1, 128)),                # fc3
                full((1, 128)), full((1, 128)),                  # LN gamma/beta
            ],
            out_specs=pl.BlockSpec((tm_eff, 128), lambda i: (i, 0)),
        ),
        compiler_params=pltpu.CompilerParams(
            dimension_semantics=("parallel",)),
    )(x, w1, b1, w2, b2, w3, b3, g, beta)


def init_params(key):
    """Deterministic synthetic init matching nn.Linear / nn.LayerNorm shapes."""
    ks = jax.random.split(key, 6)

    def linear(kw, kb, fan_in, fan_out):
        bound = 1.0 / jnp.sqrt(fan_in)
        # Stored as [in, out] so the kernel does x @ W (== x @ W_pt^T).
        # Weights in bf16 (native MXU input dtype), biases stay f32.
        w = jax.random.uniform(kw, (fan_in, fan_out), jnp.float32, -bound, bound)
        b = jax.random.uniform(kb, (1, fan_out), jnp.float32, -bound, bound)
        return w.astype(jnp.bfloat16), b

    w1, b1 = linear(ks[0], ks[1], 768, 384)
    w2, b2 = linear(ks[2], ks[3], 384, 128)
    w3, b3 = linear(ks[4], ks[5], 128, 128)
    return dict(
        w1=w1, b1=b1, w2=w2, b2=b2, w3=w3, b3=b3,
        gamma=jnp.ones((1, 128), jnp.float32),   # LayerNorm weight init
        beta=jnp.zeros((1, 128), jnp.float32),   # LayerNorm bias init
    )


def _reference(x, p):
    """Pure-JAX reference (bf16 matmul inputs / f32 accumulation, like kernel)."""
    dot = lambda a, w: jnp.dot(a.astype(jnp.bfloat16), w,
                               preferred_element_type=jnp.float32)
    h1 = jnp.maximum(dot(x, p["w1"]) + p["b1"], 0.0)
    h2 = jnp.maximum(dot(h1, p["w2"]) + p["b2"], 0.0)
    h3 = dot(h2, p["w3"]) + p["b3"]
    mean = jnp.mean(h3, axis=-1, keepdims=True)
    var = jnp.mean((h3 - mean) ** 2, axis=-1, keepdims=True)
    return (h3 - mean) * jax.lax.rsqrt(var + LN_EPS) * p["gamma"] + p["beta"]


if __name__ == "__main__":
    key = jax.random.PRNGKey(0)
    kx, kp = jax.random.split(key)

    # N is deliberately not a multiple of the row tile to exercise the masked
    # partial-edge-block path, and the tile cap ensures a 2-step grid so v7x's
    # second TensorCore is exercised.  x is bf16 at the kernel boundary.
    N = 300
    x = jax.random.normal(kx, (N, 768), jnp.float32).astype(jnp.bfloat16)
    params = init_params(kp)

    out = sp_jscc_encoder(x, params)
    out = jax.block_until_ready(out)

    assert out.shape == (N, 128)
    assert out.dtype == x.dtype

    ref = _reference(x.astype(jnp.float32), params)   # f32 epilogue reference
    # Kernel output is bf16 (rounded from identical f32 math) -> allow bf16
    # rounding slack on LN-normalized values.
    assert jnp.allclose(out.astype(jnp.float32), ref, atol=3e-2, rtol=3e-2), \
        "mismatch vs reference"

    print("KERNEL_OK")
</pallas_src>

<mosaic_0001>
module attributes {stable_mosaic.version = 11 : i64} {
  func.func @_encoder_kernel(%arg0: i32, %arg1: memref<160x768xbf16, #tpu.memory_space<vmem>>, %arg2: memref<768x384xbf16, #tpu.memory_space<vmem>>, %arg3: memref<1x384xf32, #tpu.memory_space<vmem>>, %arg4: memref<384x128xbf16, #tpu.memory_space<vmem>>, %arg5: memref<1x128xf32, #tpu.memory_space<vmem>>, %arg6: memref<128x128xbf16, #tpu.memory_space<vmem>>, %arg7: memref<1x128xf32, #tpu.memory_space<vmem>>, %arg8: memref<1x128xf32, #tpu.memory_space<vmem>>, %arg9: memref<1x128xf32, #tpu.memory_space<vmem>>, %arg10: memref<160x128xbf16, #tpu.memory_space<vmem>>) attributes {dimension_semantics = [#tpu.dimension_semantics<parallel>], iteration_bounds = array<i64: 2>, scalar_prefetch = 0 : i64, scratch_operands = 0 : i64, tpu.core_type = #tpu.core_type<tc>, window_params = [{transform_indices = @transform_0, window_bounds = array<i64: 160, 768>}, {pipeline_mode = #tpu.pipeline_mode<synchronous>, transform_indices = @transform_1, window_bounds = array<i64: 768, 384>}, {pipeline_mode = #tpu.pipeline_mode<synchronous>, transform_indices = @transform_2, window_bounds = array<i64: 1, 384>}, {pipeline_mode = #tpu.pipeline_mode<synchronous>, transform_indices = @transform_3, window_bounds = array<i64: 384, 128>}, {pipeline_mode = #tpu.pipeline_mode<synchronous>, transform_indices = @transform_4, window_bounds = array<i64: 1, 128>}, {pipeline_mode = #tpu.pipeline_mode<synchronous>, transform_indices = @transform_5, window_bounds = array<i64: 128, 128>}, {pipeline_mode = #tpu.pipeline_mode<synchronous>, transform_indices = @transform_6, window_bounds = array<i64: 1, 128>}, {pipeline_mode = #tpu.pipeline_mode<synchronous>, transform_indices = @transform_7, window_bounds = array<i64: 1, 128>}, {pipeline_mode = #tpu.pipeline_mode<synchronous>, transform_indices = @transform_8, window_bounds = array<i64: 1, 128>}, {transform_indices = @transform_9, window_bounds = array<i64: 160, 128>}]} {
    %c0 = arith.constant 0 : index
    %c0_0 = arith.constant 0 : index
    %0 = vector.load %arg1[%c0, %c0_0] : memref<160x768xbf16, #tpu.memory_space<vmem>>, vector<160x768xbf16>
    %c0_1 = arith.constant 0 : index
    %c0_2 = arith.constant 0 : index
    %1 = vector.load %arg2[%c0_1, %c0_2] : memref<768x384xbf16, #tpu.memory_space<vmem>>, vector<768x384xbf16>
    %cst = arith.constant dense<0.000000e+00> : vector<160x384xf32>
    %2 = tpu.matmul %0, %1, %cst {dimension_numbers = #tpu.dot_dimension_numbers<[1], [0], [0], [1], [0, 0, 1, 1], [], []>} : vector<160x768xbf16>, vector<768x384xbf16>, vector<160x384xf32> -> vector<160x384xf32>
    %c0_3 = arith.constant 0 : index
    %c0_4 = arith.constant 0 : index
    %3 = vector.load %arg3[%c0_3, %c0_4] : memref<1x384xf32, #tpu.memory_space<vmem>>, vector<1x384xf32>
    %4 = vector.broadcast %3 : vector<1x384xf32> to vector<160x384xf32>
    %5 = arith.addf %2, %4 : vector<160x384xf32>
    %cst_5 = arith.constant 0.000000e+00 : f32
    %6 = vector.broadcast %cst_5 : f32 to vector<160x384xf32>
    %7 = arith.maximumf %5, %6 : vector<160x384xf32>
    %8 = arith.truncf %7 : vector<160x384xf32> to vector<160x384xbf16>
    %c0_6 = arith.constant 0 : index
    %c0_7 = arith.constant 0 : index
    %9 = vector.load %arg4[%c0_6, %c0_7] : memref<384x128xbf16, #tpu.memory_space<vmem>>, vector<384x128xbf16>
    %cst_8 = arith.constant dense<0.000000e+00> : vector<160x128xf32>
    %10 = tpu.matmul %8, %9, %cst_8 {dimension_numbers = #tpu.dot_dimension_numbers<[1], [0], [0], [1], [0, 0, 1, 1], [], []>} : vector<160x384xbf16>, vector<384x128xbf16>, vector<160x128xf32> -> vector<160x128xf32>
    %c0_9 = arith.constant 0 : index
    %c0_10 = arith.constant 0 : index
    %11 = vector.load %arg5[%c0_9, %c0_10] : memref<1x128xf32, #tpu.memory_space<vmem>>, vector<1x128xf32>
    %12 = vector.broadcast %11 : vector<1x128xf32> to vector<160x128xf32>
    %13 = arith.addf %10, %12 : vector<160x128xf32>
    %cst_11 = arith.constant 0.000000e+00 : f32
    %14 = vector.broadcast %cst_11 : f32 to vector<160x128xf32>
    %15 = arith.maximumf %13, %14 : vector<160x128xf32>
    %16 = arith.truncf %15 : vector<160x128xf32> to vector<160x128xbf16>
    %c0_12 = arith.constant 0 : index
    %c0_13 = arith.constant 0 : index
    %17 = vector.load %arg6[%c0_12, %c0_13] : memref<128x128xbf16, #tpu.memory_space<vmem>>, vector<128x128xbf16>
    %cst_14 = arith.constant dense<0.000000e+00> : vector<160x128xf32>
    %18 = tpu.matmul %16, %17, %cst_14 {dimension_numbers = #tpu.dot_dimension_numbers<[1], [0], [0], [1], [0, 0, 1, 1], [], []>} : vector<160x128xbf16>, vector<128x128xbf16>, vector<160x128xf32> -> vector<160x128xf32>
    %c0_15 = arith.constant 0 : index
    %c0_16 = arith.constant 0 : index
    %19 = vector.load %arg7[%c0_15, %c0_16] : memref<1x128xf32, #tpu.memory_space<vmem>>, vector<1x128xf32>
    %20 = vector.broadcast %19 : vector<1x128xf32> to vector<160x128xf32>
    %21 = arith.addf %18, %20 : vector<160x128xf32>
    %cst_17 = arith.constant dense<0.000000e+00> : vector<160xf32>
    %22 = vector.multi_reduction <add>, %21, %cst_17 [1] : vector<160x128xf32> to vector<160xf32>
    %23 = vector.shape_cast %22 : vector<160xf32> to vector<160x1xf32>
    %cst_18 = arith.constant 1.280000e+02 : f32
    %24 = vector.broadcast %cst_18 : f32 to vector<160x1xf32>
    %25 = arith.divf %23, %24 : vector<160x1xf32>
    %26 = vector.broadcast %25 : vector<160x1xf32> to vector<160x128xf32>
    %27 = arith.subf %21, %26 : vector<160x128xf32>
    %28 = arith.mulf %27, %27 : vector<160x128xf32>
    %cst_19 = arith.constant dense<0.000000e+00> : vector<160xf32>
    %29 = vector.multi_reduction <add>, %28, %cst_19 [1] : vector<160x128xf32> to vector<160xf32>
    %30 = vector.shape_cast %29 : vector<160xf32> to vector<160x1xf32>
    %cst_20 = arith.constant 1.280000e+02 : f32
    %31 = vector.broadcast %cst_20 : f32 to vector<160x1xf32>
    %32 = arith.divf %30, %31 : vector<160x1xf32>
    %cst_21 = arith.constant 9.99999974E-6 : f32
    %33 = vector.broadcast %cst_21 : f32 to vector<160x1xf32>
    %34 = arith.addf %32, %33 : vector<160x1xf32>
    %35 = math.rsqrt %34 : vector<160x1xf32>
    %36 = vector.broadcast %35 : vector<160x1xf32> to vector<160x128xf32>
    %37 = arith.mulf %27, %36 : vector<160x128xf32>
    %c0_22 = arith.constant 0 : index
    %c0_23 = arith.constant 0 : index
    %38 = vector.load %arg8[%c0_22, %c0_23] : memref<1x128xf32, #tpu.memory_space<vmem>>, vector<1x128xf32>
    %39 = vector.broadcast %38 : vector<1x128xf32> to vector<160x128xf32>
    %40 = arith.mulf %37, %39 : vector<160x128xf32>
    %c0_24 = arith.constant 0 : index
    %c0_25 = arith.constant 0 : index
    %41 = vector.load %arg9[%c0_24, %c0_25] : memref<1x128xf32, #tpu.memory_space<vmem>>, vector<1x128xf32>
    %42 = vector.broadcast %41 : vector<1x128xf32> to vector<160x128xf32>
    %43 = arith.addf %40, %42 : vector<160x128xf32>
    %44 = arith.truncf %43 : vector<160x128xf32> to vector<160x128xbf16>
    %c0_26 = arith.constant 0 : index
    %c0_27 = arith.constant 0 : index
    %45 = vector.load %arg10[%c0_26, %c0_27] : memref<160x128xbf16, #tpu.memory_space<vmem>>, vector<160x128xbf16>
    tpu.vector_store %arg10[%c0_26, %c0_27], %44 {strides = array<i32>} : memref<160x128xbf16, #tpu.memory_space<vmem>>, vector<160x128xbf16>,
    return
  }
  func.func @transform_0(%arg0: i32) -> (i32, i32) {
    %c0_i32 = arith.constant 0 : i32
    %c0_i32_0 = arith.constant 0 : i32
    return %arg0, %c0_i32 : i32, i32
  }
  func.func @transform_1(%arg0: i32) -> (i32, i32) {
    %c0_i32 = arith.constant 0 : i32
    %c0_i32_0 = arith.constant 0 : i32
    %c0_i32_1 = arith.constant 0 : i32
    return %c0_i32, %c0_i32_0 : i32, i32
  }
  func.func @transform_2(%arg0: i32) -> (i32, i32) {
    %c0_i32 = arith.constant 0 : i32
    %c0_i32_0 = arith.constant 0 : i32
    %c0_i32_1 = arith.constant 0 : i32
    return %c0_i32, %c0_i32_0 : i32, i32
  }
  func.func @transform_3(%arg0: i32) -> (i32, i32) {
    %c0_i32 = arith.constant 0 : i32
    %c0_i32_0 = arith.constant 0 : i32
    %c0_i32_1 = arith.constant 0 : i32
    return %c0_i32, %c0_i32_0 : i32, i32
  }
  func.func @transform_4(%arg0: i32) -> (i32, i32) {
    %c0_i32 = arith.constant 0 : i32
    %c0_i32_0 = arith.constant 0 : i32
    %c0_i32_1 = arith.constant 0 : i32
    return %c0_i32, %c0_i32_0 : i32, i32
  }
  func.func @transform_5(%arg0: i32) -> (i32, i32) {
    %c0_i32 = arith.constant 0 : i32
    %c0_i32_0 = arith.constant 0 : i32
    %c0_i32_1 = arith.constant 0 : i32
    return %c0_i32, %c0_i32_0 : i32, i32
  }
  func.func @transform_6(%arg0: i32) -> (i32, i32) {
    %c0_i32 = arith.constant 0 : i32
    %c0_i32_0 = arith.constant 0 : i32
    %c0_i32_1 = arith.constant 0 : i32
    return %c0_i32, %c0_i32_0 : i32, i32
  }
  func.func @transform_7(%arg0: i32) -> (i32, i32) {
    %c0_i32 = arith.constant 0 : i32
    %c0_i32_0 = arith.constant 0 : i32
    %c0_i32_1 = arith.constant 0 : i32
    return %c0_i32, %c0_i32_0 : i32, i32
  }
  func.func @transform_8(%arg0: i32) -> (i32, i32) {
    %c0_i32 = arith.constant 0 : i32
    %c0_i32_0 = arith.constant 0 : i32
    %c0_i32_1 = arith.constant 0 : i32
    return %c0_i32, %c0_i32_0 : i32, i32
  }
  func.func @transform_9(%arg0: i32) -> (i32, i32) {
    %c0_i32 = arith.constant 0 : i32
    %c0_i32_0 = arith.constant 0 : i32
    return %arg0, %c0_i32 : i32, i32
  }
}

</mosaic_0001>

<bundles_post_ra>
// kernel: sp_jscc_encoder.1
= control target key start
LH: loop header
LB: loop body
LE: loop exit
PB: predicated region body
PF: predicated region fallthrough
CT: control target
= control target key end

     0   :  { %s6345_s0 = inlined_call_operand.hbm [shape: bf16[300,768], index: 0, kind: input, shape index: {}]   ;;  %s6346_s1 = inlined_call_operand.hbm [shape: bf16[768,384], index: 1, kind: input, shape index: {}]   ;;  %s6347_s2 = inlined_call_operand.hbm [shape: f32[1,384], index: 2, kind: input, shape index: {}]   ;;  %s6348_s3 = inlined_call_operand.hbm [shape: bf16[384,128], index: 3, kind: input, shape index: {}]   ;;  %s6349_s4 = inlined_call_operand.vmem [shape: f32[1,128], index: 4, kind: input, shape index: {}]   ;;  %s6350_s5 = inlined_call_operand.hbm [shape: bf16[128,128], index: 5, kind: input, shape index: {}]   ;;  %s6351_s6 = inlined_call_operand.vmem [shape: f32[1,128], index: 6, kind: input, shape index: {}]   ;;  %s6352_s7 = inlined_call_operand.vmem [shape: f32[1,128], index: 7, kind: input, shape index: {}]   ;;  %s6353_s8 = inlined_call_operand.vmem [shape: f32[1,128], index: 8, kind: input, shape index: {}]   ;;  %s6354_s9 = inlined_call_operand.hbm [shape: bf16[300,128], index: 9, kind: output, shape index: {}]  }
   0x1   :  { %6361 = sst [smem:[#allocation25_spill]] %s6346_s1 }
   0x2   :  { %14 = vsyncpa [#allocation3], 0 }
   0x3   :  { %16 = vsyncpa [#allocation3 + $0x1], 0 }
   0x4   :  { %17 = vsyncpa [#allocation6], 0 }
   0x5   :  { %18 = vsyncpa [#allocation9], 0 }
   0x6   :  { %19 = vsyncpa [#allocation4], 0 }
   0x7   :  { %21 = vsyncpa [#allocation4 + $0x1], 0  ;;  %s5230_s30 = smov 0   ;;  %s5232_s10 = smov 0  }
   0x8   :  { %s5234_s11 = smov 0   ;;  %s5236_s12 = smov 0  }
   0x9 LB: > { %s5251_s13 = sadd.s32 4294967295, %s5164_s12   ;;  %s3737_s14 = sadd.s32 4294967294, %s5164_s12   ;;  %s5164_s12 = sphi %s5236_s12, %s6393_s12   ;;  %s5160_s11 = sphi %s5234_s11, %s6397_s11   ;;  %s5156_s10 = sphi %s5232_s10, %s6396_s10   ;;  %s5152_s30 = sphi %s5230_s30, %s6395_s30  }
   0xa   : > { %s5255_s15 = sadd.s32 1, %s5164_s12   ;;  %s34_s16 = sadd.s32 1, %s5160_s11 }
   0xb   : > { %6362 = sst [smem:[#allocation16_spill]] %s5255_s15  ;;  %s31_s17 = ssub.s32 %s5164_s12, %s5255_s15 }
   0xc   : > { %p41_p0 = scmp.ne.s32.totalorder %s5160_s11, %s5156_s10  ;;  %p32_p1 = scmp.eq.s32.totalorder %s31_s17, 0 }
   0xd   : > { %p42_p2 = scmp.eq.s32.totalorder %s5164_s12, 0  ;;  %p47_p3 = scmp.ne.s32.totalorder %s5156_s10, %s5152_s30 }
   0xe   : > { %p6355_p4 = scmp.eq.s32.totalorder %s5251_s13, 0  ;;  %p239_p7 = scmp.eq.s32.totalorder %s5251_s13, 1 }
   0xf   : > { %s5267_s18 = scalar_select %p32_p1, %s5160_s11, %s34_s16  }
  0x10   : > { %p5269_p5 = por %p42_p2, %p41_p0  ;;  %p5275_p6 = por %p6355_p4, %p47_p3 }
  0x11   : > { %6363 = sst [smem:[#allocation17_spill]] %s5267_s18  ;;  %p245_p8 = scmp.eq.s32.totalorder %s3737_s14, 1 }
  0x12   : > { %s6365_s20 = scalar_select %p5275_p6, 1, 0 }
  0x13   : > { %p3738_p9 = scmp.ge.s32.totalorder %s5164_s12, 1  ;;  %p252_p10 = scmp.lt.s32.totalorder %s5164_s12, 3 }
  0x14   : > { %p5282_p11 = por %p239_p7, %p41_p0  ;;  %p5286_p12 = por %p245_p8, %p47_p3 }
  0x15   : > { %p5290_p13 = pnand %p3738_p9, %p252_p10  ;;  %s5166_s24 = smov [#allocation5]  }
  0x16   : > { %s6366_s21 = scalar_select %p5282_p11, 1, 0 }
  0x17   : > { %s6367_s22 = scalar_select %p5286_p12, 1, 0 }
  0x18   : > { %s6368_s23 = scalar_select %p5290_p13, 1, 0 }
  0x19   : > { %p4535_p1 = pneg %p5290_p13  ;;  %s264_s25 = sshll.u32 %s5166_s24, 4  ;;  %s265_s25 = int_to_ptr.vmem [resolvable:$true] %s264_s25 }
  0x1a   : > { %s5167_s27 = smov [#allocation8]   ;;  %s4973_s29 = scalar_lea.vmem %s265_s25, 18432 }
  0x1b   : > { %p5298_p2 = pnand %p4535_p1, %p6355_p4  ;;  %s288_s28 = sshll.u32 %s5167_s27, 4  ;;  %s289_s28 = int_to_ptr.vmem [resolvable:$true] %s288_s28 }
  0x1c   : > { %p4974_p3 = scmp.ne.s32.totalorder %s265_s25, %s4973_s29  ;;  %p4981_p9 = scmp.lt.s32.totalorder %s265_s25, %s265_s25 }
  0x1d   : > { %p4964_p0 = pneg %p5298_p2  ;;  %p4982_p10 = scmp.lt.s32.totalorder %s4973_s29, %s4973_s29 }
  0x1f   : > { %p4976_p7 = pnand %p4974_p3, %p4964_p0  ;;  %p4983_p12 = por %p4982_p10, %p4981_p9 }
  0x21   : > { %p4977_p8 = pneg %p4976_p7 }
  0x23   : > { %p4984_p1 = pnand %p4983_p12, %p4977_p8 }
  0x25   : > { %4987 = shalt.err (!%p4984_p1)
}
  0x26   : > { %s5168_s14 = smov 192   ;;  %s5169_s16 = smov 12  }
  0x27   : > { %s6370_s1 = sld [smem:[#allocation25_spill]]  ;;  %s4999_s27 = scalar_lea.vmem %s289_s28, 3072 }
  0x28   : > { %p5000_p4 = scmp.ne.s32.totalorder %s289_s28, %s4999_s27  ;;  %p5007_p11 = scmp.lt.s32.totalorder %s289_s28, %s289_s28 }
  0x29   : > { %p5008_p6 = scmp.lt.s32.totalorder %s4999_s27, %s4999_s27 }
  0x2a   : > { %p5002_p3 = pnand %p5000_p4, %p4964_p0 }
  0x2b   : > { %p5009_p9 = por %p5008_p6, %p5007_p11 }
  0x2c   : > { %p5003_p7 = pneg %p5002_p3 }
  0x2d   : > { %4538 = dma.hbm_to_vmem [thread:$0]  (!%p5298_p2), %s6370_s1, 18432, %s265_s25, [#allocation6], %s5168_s14, %s5168_s14, %s5169_s16  }
  0x2e   : > { %p5010_p12 = pnand %p5009_p9, %p5003_p7 }
  0x30   : > { %5013 = shalt.err (!%p5010_p12)
}
  0x31   : > { %s5170_s29 = smov 64   ;;  %s5171_s18 = smov 4  }
  0x32   : > { %4544 = dma.hbm_to_vmem [thread:$0]  (!%p5298_p2), %s6348_s3, 3072, %s289_s28, [#allocation9], %s5170_s29, %s5170_s29, %s5171_s18  }
  0x33   : > { %s5172_s16 = smov [#allocation7]   ;;  %s5173_s24 = smov [#allocation10]  }
  0x34   : > { %s278_s17 = sshll.u32 %s5172_s16, 4  ;;  %s304_s27 = sshll.u32 %s5173_s24, 4  ;;  %s279_s17 = int_to_ptr.vmem [resolvable:$true] %s278_s17  ;;  %s305_s27 = int_to_ptr.vmem [resolvable:$true] %s304_s27 }
  0x35   : > { %s5025_s1 = scalar_lea.vmem %s279_s17, 48  ;;  %s5032_s15 = scalar_lea.vmem %s279_s17, 64 }
  0x36   : > { %p5026_p4 = scmp.ne.s32.totalorder %s279_s17, %s5025_s1  ;;  %p5033_p8 = scmp.lt.s32.totalorder %s279_s17, %s279_s17 }
  0x37   : > { %p5034_p10 = scmp.lt.s32.totalorder %s5032_s15, %s5025_s1 }
  0x38   : > { %p5028_p6 = pnand %p5026_p4, %p4964_p0 }
  0x39   : > { %p5035_p1 = por %p5034_p10, %p5033_p8 }
  0x3a   : > { %p5029_p11 = pneg %p5028_p6 }
  0x3c   : > { %p5036_p3 = pnand %p5035_p1, %p5029_p11 }
  0x3e   : > { %5039 = shalt.err (!%p5036_p3)
}
  0x3f   : > { %4541 = dma.hbm_to_vmem [thread:$0]  (!%p5298_p2), %s6347_s2, 48, %s279_s17, [#allocation6]  }
  0x40   : > { %s5051_s14 = scalar_lea.vmem %s305_s27, 1024  ;;  %p5059_p4 = scmp.lt.s32.totalorder %s305_s27, %s305_s27 }
  0x41   : > { %p5052_p7 = scmp.ne.s32.totalorder %s305_s27, %s5051_s14  ;;  %p5060_p6 = scmp.lt.s32.totalorder %s5051_s14, %s5051_s14 }
  0x43   : > { %p5054_p9 = pnand %p5052_p7, %p4964_p0  ;;  %p5061_p13 = por %p5060_p6, %p5059_p4 }
  0x45   : > { %p5055_p12 = pneg %p5054_p9 }
  0x47   : > { %p5062_p8 = pnand %p5061_p13, %p5055_p12 }
  0x49   : > { %5065 = shalt.err (!%p5062_p8)
}
  0x4a   : > { %4547 = dma.hbm_to_vmem [thread:$0]  (!%p5298_p2), %s6350_s5, 1024, %s305_s27, [#allocation9], %s5170_s29, %s5170_s29, %s5171_s18  }
  0x4b   : > { %p3743_p11 = scmp.ge.s32.totalorder %s5164_s12, 2 }
  0x4d   : > { %323 = sbr.rel (%p3743_p11) target bundleno = 117 (0x75), region = 48 }
  0x52   : > { %326 = sbr.rel (!%p5269_p5) target bundleno = 117 (0x75), region = 52  ;;  %s327_s16 = sand.u32 (%p5269_p5), 1, %s5160_s11  }
  0x53   : > { %s332_s17 = smul.u32 (%p5269_p5), 20, %s5164_s12  ;;  %s5352_s29 = scalar_lea.sflag (%p5269_p5), [#allocation3], %s327_s16 }
  0x54   : > { %s4513_s26 = smul.u32 (%p5269_p5), 480, %s327_s16 }
  0x55   : > { %s333_s24 = ssub.s32 (%p5269_p5), 38, %s332_s17 }
  0x56   : > { %p334_p13 = scmp.lt.s32.totalorder (%p5269_p5), %s333_s24, 20  ;;  %s331_s27 = scalar_lea.vmem (%p5269_p5), [#allocation2], %s4513_s26 }
  0x58   : > { %s6399_s24 = smov (!%p334_p13, %s333_s24), 20 }
  0x59   : > { %s5349_s28 = smul.u32 384, %s6399_s24 }
  0x5b   : > { %s339_s18 = ssub.s32 7680, %s5349_s28 }
  0x5c   : > { %340 = vsyncadd %s5352_s29, %s339_s18  ;;  %p3746_p5 = scmp.ne.s32.totalorder %s5349_s28, 0  ;;  %s4556_s19 = smul.u32 7680, %s5164_s12 }
  0x5d   : > { %s346_s25 = sshll.u32 %s331_s27, 4  ;;  %s5070_s24 = scalar_lea.hbm %s6345_s0, 14592  ;;  %s5362_s25 = int_to_ptr.vmem [resolvable:$true] %s346_s25 }
  0x5e   : > { %s5360_s15 = scalar_lea.hbm %s6345_s0, %s4556_s19 }
  0x5f   : > { %s5066_s16 = scalar_lea.hbm %s5360_s15, %s5349_s28  ;;  %p5071_p1 = scmp.lt.s32.totalorder %s5360_s15, %s6345_s0 }
  0x60   : > { %p5067_p2 = scmp.ne.s32.totalorder %s5360_s15, %s5066_s16  ;;  %p5072_p3 = scmp.lt.s32.totalorder %s5070_s24, %s5066_s16 }
  0x62   : > { %p5068_p0 = pnand %p5067_p2, %p3746_p5  ;;  %p5073_p7 = por %p5072_p3, %p5071_p1 }
  0x64   : > { %p5069_p10 = pneg %p5068_p0 }
  0x66   : > { %p5074_p9 = pnand %p5073_p7, %p5069_p10 }
  0x68   : > { %5077 = shalt.err (!%p5074_p9)
}
  0x69   : > { %s5078_s19 = scalar_lea.vmem %s5362_s25, %s5349_s28  ;;  %s5174_s14 = smov [#allocation2]  }
  0x6a   : > { %p5079_p12 = scmp.ne.s32.totalorder %s5362_s25, %s5078_s19  ;;  %s5082_s1 = sshll.u32 %s5174_s14, 4  ;;  %s5083_s1 = int_to_ptr.vmem [resolvable:$false] %s5082_s1 }
  0x6b   : > { %s5084_s17 = scalar_lea.vmem %s5083_s1, 15360  ;;  %p5085_p8 = scmp.lt.s32.totalorder %s5362_s25, %s5083_s1 }
  0x6c   : > { %p5080_p4 = pnand %p5079_p12, %p3746_p5  ;;  %p5086_p13 = scmp.lt.s32.totalorder %s5084_s17, %s5078_s19 }
  0x6e   : > { %p5081_p6 = pneg %p5080_p4  ;;  %p5087_p2 = por %p5086_p13, %p5085_p8 }
  0x70   : > { %p5088_p0 = pnand %p5087_p2, %p5081_p6 }
  0x72   : > { %5091 = shalt.err (!%p5088_p0)
}
  0x73   : > { %s5175_s16 = smov 384   ;;  %s5176_s26 = smov 24  }
  0x74   : > { %352 = dma.hbm_to_vmem [thread:$0]  (%p3746_p5), %s5360_s15, %s5349_s28, %s5362_s25, %s5352_s29, %s5175_s16, %s5175_s16, %s5176_s26  }
  0x75 PF: > { %p6371_p10 = scmp.ne.s32.totalorder %s6368_s23, 0 }
  0x77   : > { %358 = sbr.rel (%p6371_p10) target bundleno = 1389 (0x56d), region = 56 }
  0x7c   : > { %s5391_s24 = sand.u32 1, %s5156_s10   ;;  %p6372_p1 = scmp.ne.s32.totalorder %s6365_s20, 0 }
  0x7d   : > { %s4515_s18 = smul.u32 480, %s5391_s24  ;;  %s361_s27 = scalar_lea.sflag [#allocation3], %s5391_s24 }
  0x7f   : > { %s5395_s19 = scalar_lea.vmem [#allocation2], %s4515_s18 }
  0x80   : > { %5135 = dma.done.wait (%p6372_p1), %s361_s27, 7680  }
  0x81   : > { %5137 = vsyncadd (%p6372_p1), %s361_s27, 4294959616  ;;  %p6373_p5 = scmp.eq.s32.totalorder %s5251_s13, 0 }
  0x83   : > { %5139 = dma.done.wait (%p6373_p5), [#allocation6], 18480   ;;  %p6374_p3 = pmov %p6373_p5 }
  0x85   : > { %5141 = vsyncadd (%p6374_p3), [#allocation6], 4294948816  ;;  %p6375_p7 = pmov %p6374_p3 }
  0x86   : > { %p6376_p9 = pmov %p6374_p3 }
  0x87   : > { %5143 = dma.done.wait (%p6375_p7), [#allocation9], 4096  }
  0x88   : > { %5145 = vsyncadd (%p6376_p9), [#allocation9], 4294963200  ;;  %v4606_v0 = vld [vmem:[#allocation5 + $0xac] ss:$12 sps:$4 sm:$0xff]   ;;  %v4610_v2 = vld [vmem:[#allocation5 + $0xa8] ss:$12 sps:$4 sm:$0xff]  }
  0x89   : > { %v4608_v1 = vld [vmem:[#allocation5 + $0x22c] ss:$12 sps:$4 sm:$0xff]   ;;  %1764 = vmatprep.subr.bf16.mxu0 %v4606_v0  ;;  %v4611_v3 = vld [vmem:[#allocation5 + $0x228] ss:$12 sps:$4 sm:$0xff]   ;;  %v4616_v6 = vld [vmem:[#allocation5 + $0x90] ss:$12 sps:$4 sm:$0xff]  }
  0x8a   : > { %1897 = vmatprep.subr.bf16.mxu1 %v4608_v1  ;;  %v4612_v4 = vld [vmem:[#allocation5 + $0x94] ss:$12 sps:$4 sm:$0xff]   ;;  %1765 = vmatpush1.bf16.msra.mxu0 %v4610_v2  ;;  %v4617_v7 = vld [vmem:[#allocation5 + $0x210] ss:$12 sps:$4 sm:$0xff]   ;;  %v4622_v10 = vld [vmem:[#allocation5 + $0x78] ss:$12 sps:$4 sm:$0xff]  }
  0x8b   : > { %1898 = vmatpush1.bf16.msra.mxu1 %v4611_v3  ;;  %v4614_v5 = vld [vmem:[#allocation5 + $0x214] ss:$12 sps:$4 sm:$0xff]   ;;  %1766 = vmatprep.subr.bf16.mxu0 %v4612_v4  ;;  %v4618_v8 = vld [vmem:[#allocation5 + $0x7c] ss:$12 sps:$4 sm:$0xff]   ;;  %v4623_v11 = vld [vmem:[#allocation5 + $0x1f8] ss:$12 sps:$4 sm:$0xff]  }
  0x8c   : > { %1899 = vmatprep.subr.bf16.mxu1 %v4614_v5  ;;  %v4620_v9 = vld [vmem:[#allocation5 + $0x1fc] ss:$12 sps:$4 sm:$0xff]   ;;  %v4624_v12 = vld [vmem:[#allocation5 + $0x64] ss:$12 sps:$4 sm:$0xff]   ;;  %v4628_v14 = vld [vmem:[#allocation5 + $0x60] ss:$12 sps:$4 sm:$0xff]  }
  0x8d   : > { %v4626_v13 = vld [vmem:[#allocation5 + $0x1e4] ss:$12 sps:$4 sm:$0xff]   ;;  %v4629_v15 = vld [vmem:[#allocation5 + $0x1e0] ss:$12 sps:$4 sm:$0xff]   ;;  %v4634_v18 = vld [vmem:[#allocation5 + $0x48] ss:$12 sps:$4 sm:$0xff]  }
  0x8e   : > { %1767 = vmatpush1.bf16.msra.mxu0 %v4616_v6  ;;  %v4630_v16 = vld [vmem:[#allocation5 + $0x4c] ss:$12 sps:$4 sm:$0xff]   ;;  %v4635_v19 = vld [vmem:[#allocation5 + $0x1c8] ss:$12 sps:$4 sm:$0xff]   ;;  %v4640_v22 = vld [vmem:[#allocation5 + $0x30] ss:$12 sps:$4 sm:$0xff]  }
  0x8f   : > { %1900 = vmatpush1.bf16.msra.mxu1 %v4617_v7  ;;  %1768 = vmatprep.subr.bf16.mxu0 %v4618_v8  ;;  %v4632_v17 = vld [vmem:[#allocation5 + $0x1cc] ss:$12 sps:$4 sm:$0xff]   ;;  %v4636_v20 = vld [vmem:[#allocation5 + $0x34] ss:$12 sps:$4 sm:$0xff]   ;;  %v4641_v23 = vld [vmem:[#allocation5 + $0x1b0] ss:$12 sps:$4 sm:$0xff]  }
  0x90   : > { %1901 = vmatprep.subr.bf16.mxu1 %v4620_v9  ;;  %v4638_v21 = vld [vmem:[#allocation5 + $0x1b4] ss:$12 sps:$4 sm:$0xff]   ;;  %v4642_v24 = vld [vmem:[#allocation5 + $0x1c] ss:$12 sps:$4 sm:$0xff]   ;;  %v4646_v26 = vld [vmem:[#allocation5 + $0x18] ss:$12 sps:$4 sm:$0xff]  }
  0x91   : > { %v4644_v25 = vld [vmem:[#allocation5 + $0x19c] ss:$12 sps:$4 sm:$0xff]   ;;  %v4647_v27 = vld [vmem:[#allocation5 + $0x198] ss:$12 sps:$4 sm:$0xff]   ;;  %v4652_v30 = vld [vmem:[#allocation5] ss:$12 sps:$4 sm:$0xff]  }
  0x92   : > { %1769 = vmatpush1.bf16.msra.mxu0 %v4622_v10  ;;  %v4648_v28 = vld [vmem:[#allocation5 + $0x4] ss:$12 sps:$4 sm:$0xff]   ;;  %v4653_v31 = vld [vmem:[#allocation5 + $0x180] ss:$12 sps:$4 sm:$0xff]   ;;  %v4658_v34 = vld [vmem:[#allocation5 + $0x168] ss:$12 sps:$4 sm:$0xff]  }
  0x93   : > { %1902 = vmatpush1.bf16.msra.mxu1 %v4623_v11  ;;  %1770 = vmatprep.subr.bf16.mxu0 %v4624_v12  ;;  %v4650_v29 = vld [vmem:[#allocation5 + $0x184] ss:$12 sps:$4 sm:$0xff]   ;;  %v4654_v32 = vld [vmem:[#allocation5 + $0x16c] ss:$12 sps:$4 sm:$0xff]   ;;  %v4659_v35 = vld [vmem:[#allocation5 + $0x2e8] ss:$12 sps:$4 sm:$0xff]  }
  0x94   : > { %1903 = vmatprep.subr.bf16.mxu1 %v4626_v13  ;;  %v4656_v33 = vld [vmem:[#allocation5 + $0x2ec] ss:$12 sps:$4 sm:$0xff]   ;;  %v4660_v36 = vld [vmem:[#allocation5 + $0x154] ss:$12 sps:$4 sm:$0xff]   ;;  %v4664_v38 = vld [vmem:[#allocation5 + $0x150] ss:$12 sps:$4 sm:$0xff]  }
  0x95   : > { %v4662_v37 = vld [vmem:[#allocation5 + $0x2d4] ss:$12 sps:$4 sm:$0xff]   ;;  %v4665_v39 = vld [vmem:[#allocation5 + $0x2d0] ss:$12 sps:$4 sm:$0xff]   ;;  %v4670_v42 = vld [vmem:[#allocation5 + $0x138] ss:$12 sps:$4 sm:$0xff]  }
  0x96   : > { %1771 = vmatpush1.bf16.msra.mxu0 %v4628_v14  ;;  %v4666_v40 = vld [vmem:[#allocation5 + $0x13c] ss:$12 sps:$4 sm:$0xff]   ;;  %v4671_v43 = vld [vmem:[#allocation5 + $0x2b8] ss:$12 sps:$4 sm:$0xff]   ;;  %v4676_v46 = vld [vmem:[#allocation5 + $0x120] ss:$12 sps:$4 sm:$0xff]  }
  0x97   : > { %1904 = vmatpush1.bf16.msra.mxu1 %v4629_v15  ;;  %1772 = vmatprep.subr.bf16.mxu0 %v4630_v16  ;;  %v4668_v41 = vld [vmem:[#allocation5 + $0x2bc] ss:$12 sps:$4 sm:$0xff]   ;;  %v4672_v44 = vld [vmem:[#allocation5 + $0x124] ss:$12 sps:$4 sm:$0xff]   ;;  %v4677_v47 = vld [vmem:[#allocation5 + $0x2a0] ss:$12 sps:$4 sm:$0xff]  }
  0x98   : > { %1905 = vmatprep.subr.bf16.mxu1 %v4632_v17  ;;  %v4674_v45 = vld [vmem:[#allocation5 + $0x2a4] ss:$12 sps:$4 sm:$0xff]   ;;  %v4678_v48 = vld [vmem:[#allocation5 + $0x10c] ss:$12 sps:$4 sm:$0xff]   ;;  %v4682_v52 = vld [vmem:[#allocation5 + $0x108] ss:$12 sps:$4 sm:$0xff]  }
  0x99   : > { %v5410_v49 = vld [vmem:[%s5395_s19 + $0x4] ss:$24 sps:$4 sm:$0xff]   ;;  %v4680_v50 = vld [vmem:[#allocation5 + $0x28c] ss:$12 sps:$4 sm:$0xff]   ;;  %v4683_v53 = vld [vmem:[#allocation5 + $0x288] ss:$12 sps:$4 sm:$0xff]  }
  0x9a   : > { %1773 = vmatpush1.bf16.msra.mxu0 %v4634_v18  ;;  %v4707_v51 = vld [vmem:[%s5395_s19 + $0xc] ss:$24 sps:$4 sm:$0xff]   ;;  %1796 = vmatprep.mubr.bf16.mxu0 %v5410_v49  ;;  %v4684_v54 = vld [vmem:[#allocation5 + $0xf4] ss:$12 sps:$4 sm:$0xff]   ;;  %v4688_v56 = vld [vmem:[#allocation5 + $0xf0] ss:$12 sps:$4 sm:$0xff]  }
  0x9b   : > { %1906 = vmatpush1.bf16.msra.mxu1 %v4635_v19  ;;  %1774 = vmatprep.subr.bf16.mxu0 %v4636_v20  ;;  %v4686_v55 = vld [vmem:[#allocation5 + $0x274] ss:$12 sps:$4 sm:$0xff]   ;;  %v4689_v57 = vld [vmem:[#allocation5 + $0x270] ss:$12 sps:$4 sm:$0xff]   ;;  %v4694_v60 = vld [vmem:[#allocation5 + $0xd8] ss:$12 sps:$4 sm:$0xff]  }
  0x9c   : > { %1907 = vmatprep.subr.bf16.mxu1 %v4638_v21  ;;  %1929 = vmatprep.mubr.bf16.mxu1 %v4707_v51  ;;  %v4690_v58 = vld [vmem:[#allocation5 + $0xdc] ss:$12 sps:$4 sm:$0xff]   ;;  %v4695_v61 = vld [vmem:[#allocation5 + $0x258] ss:$12 sps:$4 sm:$0xff]   ;;  %v4700_v0 = vld [vmem:[#allocation5 + $0xc0] ss:$12 sps:$4 sm:$0xff]  }
  0x9d   : > { %v4692_v59 = vld [vmem:[#allocation5 + $0x25c] ss:$12 sps:$4 sm:$0xff]   ;;  %v4696_v62 = vld [vmem:[#allocation5 + $0xc4] ss:$12 sps:$4 sm:$0xff]   ;;  %v4701_v1 = vld [vmem:[#allocation5 + $0x240] ss:$12 sps:$4 sm:$0xff]  }
  0x9e   : > { %1775 = vmatpush1.bf16.msra.mxu0 %v4640_v22  ;;  %v4698_v63 = vld [vmem:[#allocation5 + $0x244] ss:$12 sps:$4 sm:$0xff]   ;;  %v4710_v2 = vld [vmem:[#allocation5 + $0x3ac] ss:$12 sps:$4 sm:$0xff]   ;;  %v4705_v5 = vld [vmem:[%s5395_s19 + $0x8] ss:$24 sps:$4 sm:$0xff]  }
  0x9f   : > { %1908 = vmatpush1.bf16.msra.mxu1 %v4641_v23  ;;  %1776 = vmatprep.subr.bf16.mxu0 %v4642_v24  ;;  %v5415_v3 = vld [vmem:[%s5395_s19] ss:$24 sps:$4 sm:$0xff]   ;;  %v4711_v4 = vld [vmem:[#allocation5 + $0x170] ss:$12 sps:$4 sm:$0xff]   ;;  %v4708_v6 = vld [vmem:[#allocation5 + $0x3a8] ss:$12 sps:$4 sm:$0xff]  }
  0xa0   : > { %1909 = vmatprep.subr.bf16.mxu1 %v4644_v25  ;;  %v4712_v7 = vld [vmem:[#allocation5 + $0xb0] ss:$12 sps:$4 sm:$0xff]   ;;  %v4715_v8 = vld [vmem:[#allocation5 + $0x394] ss:$12 sps:$4 sm:$0xff]   ;;  %v4725_v11 = vld [vmem:[#allocation5 + $0x158] ss:$12 sps:$4 sm:$0xff]  }
  0xa1   : > { %v5419_v9 = vld [vmem:[%s5395_s19 + $0x34] ss:$24 sps:$4 sm:$0xff]   ;;  %v4713_v12 = vld [vmem:[#allocation5 + $0x390] ss:$12 sps:$4 sm:$0xff]   ;;  %v4726_v14 = vld [vmem:[#allocation5 + $0x98] ss:$12 sps:$4 sm:$0xff]  }
  0xa2   : > { %1777 = vmatpush1.bf16.msra.mxu0 %v4646_v26  ;;  %v5422_v10 = vld [vmem:[%s5395_s19 + $0x3c] ss:$24 sps:$4 sm:$0xff]   ;;  %v5427_v15 = vld [vmem:[%s5395_s19 + $0x30] ss:$24 sps:$4 sm:$0xff]   ;;  %v4739_v16 = vld [vmem:[#allocation5 + $0x140] ss:$12 sps:$4 sm:$0xff]  }
  0xa3   : > { %1910 = vmatpush1.bf16.msra.mxu1 %v4647_v27  ;;  %1778 = vmatprep.subr.bf16.mxu0 %v4648_v28  ;;  %v4724_v13 = vld [vmem:[#allocation5 + $0x37c] ss:$12 sps:$4 sm:$0xff]   ;;  %v5431_v17 = vld [vmem:[%s5395_s19 + $0x38] ss:$24 sps:$4 sm:$0xff]   ;;  %v5437_v20 = vld [vmem:[%s5395_s19 + $0x6c] ss:$24 sps:$4 sm:$0xff]  }
  0xa4   : > { %1911 = vmatprep.subr.bf16.mxu1 %v4650_v29  ;;  %v4722_v18 = vld [vmem:[#allocation5 + $0x378] ss:$12 sps:$4 sm:$0xff]   ;;  %v4744_v22 = vld [vmem:[#allocation5 + $0x80] ss:$12 sps:$4 sm:$0xff]   ;;  %v4759_v23 = vld [vmem:[#allocation5 + $0x128] ss:$12 sps:$4 sm:$0xff]  }
  0xa5   : > { %v5434_v19 = vld [vmem:[%s5395_s19 + $0x64] ss:$24 sps:$4 sm:$0xff]   ;;  %v4731_v24 = vld [vmem:[#allocation5 + $0x360] ss:$12 sps:$4 sm:$0xff]   ;;  %v4760_v28 = vld [vmem:[#allocation5 + $0x68] ss:$12 sps:$4 sm:$0xff]  }
  0xa6   : > { %1779 = vmatpush1.bf16.msra.mxu0 %v4652_v30  ;;  %v4733_v21 = vld [vmem:[#allocation5 + $0x364] ss:$12 sps:$4 sm:$0xff]   ;;  %v5444_v25 = vld [vmem:[%s5395_s19 + $0x60] ss:$24 sps:$4 sm:$0xff]   ;;  %v4736_v29 = vld [vmem:[#allocation5 + $0x348] ss:$12 sps:$4 sm:$0xff]  }
  0xa7   : > { %1912 = vmatpush1.bf16.msra.mxu1 %v4653_v31  ;;  %1780 = vmatprep.subr.bf16.mxu0 %v4654_v32  ;;  %v4738_v26 = vld [vmem:[#allocation5 + $0x34c] ss:$12 sps:$4 sm:$0xff]   ;;  %v5447_v27 = vld [vmem:[%s5395_s19 + $0x68] ss:$24 sps:$4 sm:$0xff]   ;;  %v5453_v31 = vld [vmem:[%s5395_s19 + $0x9c] ss:$24 sps:$4 sm:$0xff]  }
  0xa8   : > { %1913 = vmatprep.subr.bf16.mxu1 %v4656_v33  ;;  %v5450_v30 = vld [vmem:[%s5395_s19 + $0x94] ss:$24 sps:$4 sm:$0xff]   ;;  %v4773_v33 = vld [vmem:[#allocation5 + $0x110] ss:$12 sps:$4 sm:$0xff]   ;;  %s4516_s17 = smul.u32 80, %s5391_s24  ;;  %s3607_s26 = scalar_lea.sflag [#allocation4], %s5391_s24 }
  0xa9   : > { %v4749_v32 = vld [vmem:[#allocation5 + $0x334] ss:$12 sps:$4 sm:$0xff]   ;;  %p6391_p12 = scmp.ne.s32.totalorder %s6366_s21, 0 }
  0xaa   : > { %1781 = vmatpush2.bf16.msra.mxu0 %v4658_v34  ;;  %v4774_v34 = vld [vmem:[#allocation5 + $0x50] ss:$12 sps:$4 sm:$0xff]   ;;  %v5482_v51 = vld [vmem:[%s5395_s19 + $0xf4] ss:$24 sps:$4 sm:$0xff]   ;;  %s6221_s16 = scalar_lea.vmem [#allocation11], %s4516_s17  ;;  %s3614_s18 = smul.u32 (%p6391_p12), 20, %s5251_s13 }
  0xab   : > { %1914 = vmatpush2.bf16.msra.mxu1 %v4659_v35  ;;  %1782 = vmatprep.subr.bf16.mxu0 %v4660_v36  ;;  %v4747_v35 = vld [vmem:[#allocation5 + $0x330] ss:$12 sps:$4 sm:$0xff]  }
  0xac   : > { %1915 = vmatprep.subr.bf16.mxu1 %v4662_v37  ;;  %v5460_v36 = vld [vmem:[%s5395_s19 + $0x90] ss:$24 sps:$4 sm:$0xff]   ;;  %s3615_s27 = ssub.s32 (%p6391_p12), 38, %s3614_s18 }
  0xad   : > { %v5463_v37 = vld [vmem:[%s5395_s19 + $0x98] ss:$24 sps:$4 sm:$0xff]   ;;  %p3616_p4 = scmp.lt.s32.totalorder (%p6391_p12), %s3615_s27, 20 }
  0xae   : > { %1783 = vmatpush2.bf16.msra.mxu0 %v4664_v38  ;;  %v4752_v38 = vld [vmem:[#allocation5 + $0x31c] ss:$12 sps:$4 sm:$0xff]  }
  0xaf   : > { %1916 = vmatpush2.bf16.msra.mxu1 %v4665_v39  ;;  %1784 = vmatprep.subr.bf16.mxu0 %v4666_v40  ;;  %v4787_v39 = vld [vmem:[#allocation5 + $0xf8] ss:$12 sps:$4 sm:$0xff]  }
  0xb0   : > { %1917 = vmatprep.subr.bf16.mxu1 %v4668_v41  ;;  %v4750_v40 = vld [vmem:[#allocation5 + $0x318] ss:$12 sps:$4 sm:$0xff]  }
  0xb1   : > { %v5466_v41 = vld [vmem:[%s5395_s19 + $0xc4] ss:$24 sps:$4 sm:$0xff]  }
  0xb2   : > { %1785 = vmatpush2.bf16.msra.mxu0 %v4670_v42  ;;  %v5469_v42 = vld [vmem:[%s5395_s19 + $0xcc] ss:$24 sps:$4 sm:$0xff]  }
  0xb3   : > { %1918 = vmatpush2.bf16.msra.mxu1 %v4671_v43  ;;  %1786 = vmatprep.subr.bf16.mxu0 %v4672_v44  ;;  %v4788_v43 = vld [vmem:[#allocation5 + $0x38] ss:$12 sps:$4 sm:$0xff]  }
  0xb4   : > { %1919 = vmatprep.subr.bf16.mxu1 %v4674_v45  ;;  %v4763_v44 = vld [vmem:[#allocation5 + $0x304] ss:$12 sps:$4 sm:$0xff]   ;;  %v4761_v45 = vld [vmem:[#allocation5 + $0x300] ss:$12 sps:$4 sm:$0xff]  }
  0xb6   : > { %1787 = vmatpush2.bf16.msra.mxu0 %v4676_v46  ;;  %v5476_v46 = vld [vmem:[%s5395_s19 + $0xc0] ss:$24 sps:$4 sm:$0xff]  }
  0xb7   : > { %1920 = vmatpush2.bf16.msra.mxu1 %v4677_v47  ;;  %1788 = vmatprep.subr.bf16.mxu0 %v4678_v48  ;;  %v5479_v47 = vld [vmem:[%s5395_s19 + $0xc8] ss:$24 sps:$4 sm:$0xff]   ;;  %v4772_v48 = vld [vmem:[#allocation5 + $0x46c] ss:$12 sps:$4 sm:$0xff]  }
  0xb8   : > { %1921 = vmatprep.subr.bf16.mxu1 %v4680_v50  ;;  %v4801_v50 = vld [vmem:[#allocation5 + $0xe0] ss:$12 sps:$4 sm:$0xff]  }
  0xba   : > { %1789 = vmatpush2.bf16.msra.mxu0 %v4682_v52  ;;  %v5485_v52 = vld [vmem:[%s5395_s19 + $0xfc] ss:$24 sps:$4 sm:$0xff]  }
  0xbb   : > { %1922 = vmatpush2.bf16.msra.mxu1 %v4683_v53  ;;  %1790 = vmatprep.subr.bf16.mxu0 %v4684_v54  ;;  %v4770_v53 = vld [vmem:[#allocation5 + $0x468] ss:$12 sps:$4 sm:$0xff]   ;;  %v4806_v54 = vld [vmem:[#allocation5 + $0x20] ss:$12 sps:$4 sm:$0xff]  }
  0xbc   : > { %1923 = vmatprep.subr.bf16.mxu1 %v4686_v55  ;;  %v4777_v55 = vld [vmem:[#allocation5 + $0x454] ss:$12 sps:$4 sm:$0xff]  }
  0xbe   : > { %1791 = vmatpush2.bf16.msra.mxu0 %v4688_v56  ;;  %v5492_v56 = vld [vmem:[%s5395_s19 + $0xf0] ss:$24 sps:$4 sm:$0xff]  }
  0xbf   : > { %1924 = vmatpush2.bf16.msra.mxu1 %v4689_v57  ;;  %1792 = vmatprep.subr.bf16.mxu0 %v4690_v58  ;;  %v5495_v57 = vld [vmem:[%s5395_s19 + $0xf8] ss:$24 sps:$4 sm:$0xff]  }
  0xc0   : > { %1925 = vmatprep.subr.bf16.mxu1 %v4692_v59  ;;  %v4775_v58 = vld [vmem:[#allocation5 + $0x450] ss:$12 sps:$4 sm:$0xff]  }
  0xc1   : > { %v5498_v59 = vld [vmem:[%s5395_s19 + $0x124] ss:$24 sps:$4 sm:$0xff]  }
  0xc2   : > { %1793 = vmatpush2.bf16.msra.mxu0 %v4694_v60  ;;  %v5501_v60 = vld [vmem:[%s5395_s19 + $0x12c] ss:$24 sps:$4 sm:$0xff]  }
  0xc3   : > { %1926 = vmatpush2.bf16.msra.mxu1 %v4695_v61  ;;  %1794 = vmatprep.subr.bf16.mxu0 %v4696_v62  ;;  %v4786_v61 = vld [vmem:[#allocation5 + $0x43c] ss:$12 sps:$4 sm:$0xff]   ;;  %v4784_v62 = vld [vmem:[#allocation5 + $0x438] ss:$12 sps:$4 sm:$0xff]  }
  0xc4   : > { %1927 = vmatprep.subr.bf16.mxu1 %v4698_v63  ;;  %v4821_v63 = vld [vmem:[#allocation5 + $0xc8] ss:$12 sps:$4 sm:$0xff]  }
  0xc6   : > { %1795 = vmatpush2.bf16.msra.mxu0 %v4700_v0  ;;  %v4822_v0 = vld [vmem:[#allocation5 + $0x8] ss:$12 sps:$4 sm:$0xff]  }
  0xc7   : > { %1928 = vmatpush2.bf16.msra.mxu1 %v4701_v1  ;;  %2030 = vmatprep.subr.bf16.mxu0 %v4710_v2  ;;  %v4795_v1 = vld [vmem:[#allocation5 + $0x424] ss:$12 sps:$4 sm:$0xff]   ;;  %v4793_v2 = vld [vmem:[#allocation5 + $0x420] ss:$12 sps:$4 sm:$0xff]  }
  0xc8   : > { %4101 = vmatprep.subr.bf16.mxu1 %v4711_v4  ;;  %v5508_v4 = vld [vmem:[%s5395_s19 + $0x120] ss:$24 sps:$4 sm:$0xff]  }
  0xc9   : > { %1797 = vmatmul.mubr.bf16.vlgmr.msra.gmra.mxu0 %v5415_v3 }
  0xca   : > { %1930 = vmatmul.mubr.bf16.vlgmr.msra.gmra.mxu1 %v4705_v5  ;;  %2031 = vmatpush1.bf16.msra.mxu0 %v4708_v6  ;;  %v5511_v5 = vld [vmem:[%s5395_s19 + $0x128] ss:$24 sps:$4 sm:$0xff]   ;;  %v4800_v6 = vld [vmem:[#allocation5 + $0x40c] ss:$12 sps:$4 sm:$0xff]  }
  0xcb   : > { %4102 = vmatpush3.bf16.msra.mxu1 %v4712_v7  ;;  %2032 = vmatprep.subr.bf16.mxu0 %v4715_v8  ;;  %v4831_v7 = vld [vmem:[#allocation5 + $0x470] ss:$12 sps:$4 sm:$0xff]   ;;  %v5514_v8 = vld [vmem:[%s5395_s19 + $0x154] ss:$24 sps:$4 sm:$0xff]  }
  0xcc   : > { %1806 = vmatprep.mubr.bf16.mxu0 %v5419_v9  ;;  %1939 = vmatprep.mubr.bf16.mxu1 %v5422_v10 }
  0xcd   : > { %4103 = vmatprep.subr.bf16.mxu1 %v4725_v11  ;;  %v5517_v11 = vld [vmem:[%s5395_s19 + $0x15c] ss:$24 sps:$4 sm:$0xff]  }
  0xce   : > { %2033 = vmatpush1.bf16.msra.mxu0 %v4713_v12  ;;  %v4798_v12 = vld [vmem:[#allocation5 + $0x408] ss:$12 sps:$4 sm:$0xff]  }
  0xcf   : > { %4104 = vmatpush3.bf16.msra.mxu1 %v4726_v14  ;;  %2034 = vmatprep.subr.bf16.mxu0 %v4724_v13  ;;  %v4811_v13 = vld [vmem:[#allocation5 + $0x3f4] ss:$12 sps:$4 sm:$0xff]   ;;  %v5524_v14 = vld [vmem:[%s5395_s19 + $0x150] ss:$24 sps:$4 sm:$0xff]  }
  0xd0   : > { %4105 = vmatprep.subr.bf16.mxu1 %v4739_v16  ;;  %v4809_v16 = vld [vmem:[#allocation5 + $0x3f0] ss:$12 sps:$4 sm:$0xff]  }
  0xd1   : > { %1807 = vmatmul.mubr.bf16.gmra.mxu0 %v5427_v15 }
  0xd2   : > { %1940 = vmatmul.mubr.bf16.gmra.mxu1 %v5431_v17  ;;  %2035 = vmatpush1.bf16.msra.mxu0 %v4722_v18  ;;  %v5527_v18 = vld [vmem:[%s5395_s19 + $0x158] ss:$24 sps:$4 sm:$0xff]  }
  0xd3   : > { %1816 = vmatprep.mubr.bf16.mxu0 %v5434_v19  ;;  %1949 = vmatprep.mubr.bf16.mxu1 %v5437_v20 }
  0xd4   : > { %2036 = vmatprep.subr.bf16.mxu0 %v4733_v21  ;;  %4106 = vmatpush3.bf16.msra.mxu1 %v4744_v22  ;;  %v4814_v21 = vld [vmem:[#allocation5 + $0x3dc] ss:$12 sps:$4 sm:$0xff]  }
  0xd5   : > { %4107 = vmatprep.subr.bf16.mxu1 %v4759_v23  ;;  %v5530_v22 = vld [vmem:[%s5395_s19 + $0x184] ss:$24 sps:$4 sm:$0xff]  }
  0xd6   : > { %2037 = vmatpush1.bf16.msra.mxu0 %v4731_v24  ;;  %v5533_v23 = vld [vmem:[%s5395_s19 + $0x18c] ss:$24 sps:$4 sm:$0xff]  }
  0xd7   : > { %2038 = vmatprep.subr.bf16.mxu0 %v4738_v26  ;;  %v4812_v24 = vld [vmem:[#allocation5 + $0x3d8] ss:$12 sps:$4 sm:$0xff]  }
  0xd8   : > { %4108 = vmatpush3.bf16.msra.mxu1 %v4760_v28  ;;  %v4825_v26 = vld [vmem:[#allocation5 + $0x3c4] ss:$12 sps:$4 sm:$0xff]   ;;  %v5540_v28 = vld [vmem:[%s5395_s19 + $0x180] ss:$24 sps:$4 sm:$0xff]  }
  0xd9   : > { %1817 = vmatmul.mubr.bf16.gmra.mxu0 %v5444_v25  ;;  %4109 = vmatprep.subr.bf16.mxu1 %v4773_v33  ;;  %v4829_v33 = vld [vmem:[#allocation5 + $0x2f0] ss:$12 sps:$4 sm:$0xff]  }
  0xda   : > { %1950 = vmatmul.mubr.bf16.gmra.mxu1 %v5447_v27  ;;  %2039 = vmatpush1.bf16.msra.mxu0 %v4736_v29  ;;  %v5543_v29 = vld [vmem:[%s5395_s19 + $0x188] ss:$24 sps:$4 sm:$0xff]  }
  0xdb   : > { %1826 = vmatprep.mubr.bf16.mxu0 %v5450_v30  ;;  %1959 = vmatprep.mubr.bf16.mxu1 %v5453_v31 }
  0xdc   : > { %2040 = vmatprep.subr.bf16.mxu0 %v4749_v32  ;;  %4110 = vmatpush3.bf16.msra.mxu1 %v4774_v34  ;;  %v4823_v32 = vld [vmem:[#allocation5 + $0x3c0] ss:$12 sps:$4 sm:$0xff]  }
  0xdd   : > { %4111 = vmatprep.subr.bf16.mxu1 %v4787_v39  ;;  %v5546_v34 = vld [vmem:[%s5395_s19 + $0x1b4] ss:$24 sps:$4 sm:$0xff]   ;;  %v5559_v39 = vld [vmem:[%s5395_s19 + $0x1b8] ss:$24 sps:$4 sm:$0xff]  }
  0xde   : > { %2041 = vmatpush1.bf16.msra.mxu0 %v4747_v35  ;;  %v5549_v35 = vld [vmem:[%s5395_s19 + $0x1bc] ss:$24 sps:$4 sm:$0xff]  }
  0xdf   : > { %2042 = vmatprep.subr.bf16.mxu0 %v4752_v38  ;;  %v5556_v38 = vld [vmem:[%s5395_s19 + $0x1b0] ss:$24 sps:$4 sm:$0xff]  }
  0xe0   : > { %4112 = vmatpush3.bf16.msra.mxu1 %v4788_v43  ;;  %v5569_v43 = vld [vmem:[%s5395_s19 + $0x10] ss:$24 sps:$4 sm:$0xff]  }
  0xe1   : > { %1827 = vmatmul.mubr.bf16.gmra.mxu0 %v5460_v36  ;;  %4113 = vmatprep.subr.bf16.mxu1 %v4801_v50  ;;  %v4836_v50 = vld [vmem:[#allocation5 + $0x2d8] ss:$12 sps:$4 sm:$0xff]  }
  0xe2   : > { %1960 = vmatmul.mubr.bf16.gmra.mxu1 %v5463_v37  ;;  %1836 = vmatprep.mubr.bf16.mxu0 %v5466_v41 }
  0xe3   : > { %1969 = vmatprep.mubr.bf16.mxu1 %v5469_v42  ;;  %2043 = vmatpush1.bf16.msra.mxu0 %v4750_v40  ;;  %v5562_v40 = vld [vmem:[%s5395_s19 + $0x14] ss:$24 sps:$4 sm:$0xff]  }
  0xe4   : > { %2044 = vmatprep.subr.bf16.mxu0 %v4763_v44  ;;  %4114 = vmatpush3.bf16.msra.mxu1 %v4806_v54  ;;  %v4830_v44 = vld [vmem:[#allocation5 + $0x230] ss:$12 sps:$4 sm:$0xff]   ;;  %v4837_v54 = vld [vmem:[#allocation5 + $0x218] ss:$12 sps:$4 sm:$0xff]  }
  0xe5   : > { %4115 = vmatprep.subr.bf16.mxu1 %v4821_v63  ;;  %v4844_v63 = vld [vmem:[#allocation5 + $0x200] ss:$12 sps:$4 sm:$0xff]  }
  0xe7   : > { %2045 = vmatpush1.bf16.msra.mxu0 %v4761_v45  ;;  %v4832_v45 = vld [vmem:[#allocation5 + $0x3b0] ss:$12 sps:$4 sm:$0xff]  }
  0xe8   : > { %2046 = vmatprep.subr.bf16.mxu0 %v4772_v48  ;;  %4116 = vmatpush3.bf16.msra.mxu1 %v4822_v0  ;;  %v5572_v48 = vld [vmem:[%s5395_s19 + $0x44] ss:$24 sps:$4 sm:$0xff]   ;;  %v4848_v0 = vld [vmem:[#allocation5 + $0x380] ss:$12 sps:$4 sm:$0xff]  }
  0xe9   : > { %1837 = vmatmul.mubr.bf16.gmra.mxu0 %v5476_v46  ;;  %4253 = vmatprep.subr.bf16.mxu1 %v4831_v7  ;;  %v4862_v7 = vld [vmem:[#allocation5 + $0x410] ss:$12 sps:$4 sm:$0xff]  }
  0xea   : > { %1970 = vmatmul.mubr.bf16.gmra.mxu1 %v5479_v47  ;;  %1846 = vmatprep.mubr.bf16.mxu0 %v5482_v51 }
  0xeb   : > { %1979 = vmatprep.mubr.bf16.mxu1 %v5485_v52  ;;  %2047 = vmatpush2.bf16.msra.mxu0 %v4770_v53  ;;  %v4838_v53 = vld [vmem:[#allocation5 + $0x458] ss:$12 sps:$4 sm:$0xff]  }
  0xec   : > { %2048 = vmatprep.subr.bf16.mxu0 %v4777_v55  ;;  %v4839_v55 = vld [vmem:[#allocation5 + $0x398] ss:$12 sps:$4 sm:$0xff]  }
  0xef   : > { %2049 = vmatpush2.bf16.msra.mxu0 %v4775_v58  ;;  %v4843_v58 = vld [vmem:[#allocation5 + $0x2c0] ss:$12 sps:$4 sm:$0xff]  }
  0xf0   : > { %2050 = vmatprep.subr.bf16.mxu0 %v4786_v61  ;;  %v4845_v61 = vld [vmem:[#allocation5 + $0x440] ss:$12 sps:$4 sm:$0xff]  }
  0xf1   : > { %1847 = vmatmul.mubr.bf16.gmra.mxu0 %v5492_v56 }
  0xf2   : > { %1980 = vmatmul.mubr.bf16.gmra.mxu1 %v5495_v57  ;;  %1856 = vmatprep.mubr.bf16.mxu0 %v5498_v59 }
  0xf3   : > { %1989 = vmatprep.mubr.bf16.mxu1 %v5501_v60  ;;  %2051 = vmatpush2.bf16.msra.mxu0 %v4784_v62  ;;  %v5582_v62 = vld [vmem:[%s5395_s19 + $0x74] ss:$24 sps:$4 sm:$0xff]  }
  0xf4   : > { %2052 = vmatprep.subr.bf16.mxu0 %v4795_v1  ;;  %v4855_v1 = vld [vmem:[#allocation5 + $0x428] ss:$12 sps:$4 sm:$0xff]  }
  0xf7   : > { %2053 = vmatpush2.bf16.msra.mxu0 %v4793_v2  ;;  %v4856_v2 = vld [vmem:[#allocation5 + $0x368] ss:$12 sps:$4 sm:$0xff]  }
  0xf8   : > { %2054 = vmatprep.subr.bf16.mxu0 %v4800_v6  ;;  %v4860_v6 = vld [vmem:[#allocation5 + $0x290] ss:$12 sps:$4 sm:$0xff]  }
  0xf9   : > { %1857 = vmatmul.mubr.bf16.gmra.mxu0 %v5508_v4 }
  0xfa   : > { %1990 = vmatmul.mubr.bf16.gmra.mxu1 %v5511_v5  ;;  %1866 = vmatprep.mubr.bf16.mxu0 %v5514_v8 }
  0xfb   : > { %1999 = vmatprep.mubr.bf16.mxu1 %v5517_v11  ;;  %2055 = vmatpush2.bf16.msra.mxu0 %v4798_v12  ;;  %v5589_v12 = vld [vmem:[%s5395_s19 + $0x70] ss:$24 sps:$4 sm:$0xff]  }
  0xfc   : > { %2056 = vmatprep.subr.bf16.mxu0 %v4811_v13  ;;  %v5592_v13 = vld [vmem:[%s5395_s19 + $0xa4] ss:$24 sps:$4 sm:$0xff]  }
  0xff   : > { %2057 = vmatpush2.bf16.msra.mxu0 %v4809_v16  ;;  %v4861_v16 = vld [vmem:[#allocation5 + $0x1d0] ss:$12 sps:$4 sm:$0xff]  }
 0x100   : > { %2058 = vmatprep.subr.bf16.mxu0 %v4814_v21  ;;  %v4863_v21 = vld [vmem:[#allocation5 + $0x350] ss:$12 sps:$4 sm:$0xff]  }
 0x101   : > { %1867 = vmatmul.mubr.bf16.gmra.mxu0 %v5524_v14 }
 0x102   : > { %2000 = vmatmul.mubr.bf16.gmra.mxu1 %v5527_v18  ;;  %1876 = vmatprep.mubr.bf16.mxu0 %v5530_v22 }
 0x103   : > { %2009 = vmatprep.mubr.bf16.mxu1 %v5533_v23  ;;  %2059 = vmatpush2.bf16.msra.mxu0 %v4812_v24  ;;  %v4869_v24 = vld [vmem:[#allocation5 + $0x3f8] ss:$12 sps:$4 sm:$0xff]  }
 0x104   : > { %2060 = vmatprep.subr.bf16.mxu0 %v4825_v26  ;;  %v4870_v26 = vld [vmem:[#allocation5 + $0x338] ss:$12 sps:$4 sm:$0xff]  }
 0x107   : > { %2061 = vmatpush2.bf16.msra.mxu0 %v4823_v32  ;;  %v4874_v32 = vld [vmem:[#allocation5 + $0x260] ss:$12 sps:$4 sm:$0xff]  }
 0x108   : > { %4177 = vmatprep.subr.bf16.mxu0 %v4829_v33  ;;  %v4876_v33 = vld [vmem:[#allocation5 + $0x3e0] ss:$12 sps:$4 sm:$0xff]  }
 0x109   : > { %1877 = vmatmul.mubr.bf16.gmra.mxu0 %v5540_v28 }
 0x10a   : > { %2010 = vmatmul.mubr.bf16.gmra.mxu1 %v5543_v29  ;;  %1886 = vmatprep.mubr.bf16.mxu0 %v5546_v34 }
 0x10b   : > { %2019 = vmatprep.mubr.bf16.mxu1 %v5549_v35 }
 0x111   : > { %1887 = vmatmul.mubr.bf16.gmra.mxu0 %v5556_v38 }
 0x112   : > { %2020 = vmatmul.mubr.bf16.gmra.mxu1 %v5559_v39  ;;  %2062 = vmatprep.mubr.bf16.mxu0 %v5562_v40 }
 0x113   : > { %2195 = vmatprep.mubr.bf16.mxu1 %v5410_v49  ;;  %v5579_v49 = vld [vmem:[%s5395_s19 + $0x40] ss:$24 sps:$4 sm:$0xff]  }
 0x119   : > { %2063 = vmatmul.mubr.bf16.vlgmr.msra.gmra.mxu0 %v5569_v43 }
 0x11a   : > { %2196 = vmatmul.mubr.bf16.vlgmr.msra.gmra.mxu1 %v5415_v3  ;;  %4178 = vmatpush3.bf16.msra.mxu0 %v4830_v44  ;;  %v4850_v3 = vld [vmem:[#allocation5 + $0x2a8] ss:$12 sps:$4 sm:$0xff]   ;;  %v5599_v44 = vld [vmem:[%s5395_s19 + $0xa0] ss:$24 sps:$4 sm:$0xff]  }
 0x11b   : > { %4254 = vmatpush3.bf16.msra.mxu1 %v4832_v45  ;;  %2072 = vmatprep.mubr.bf16.mxu0 %v5572_v48  ;;  %v5602_v45 = vld [vmem:[%s5395_s19 + $0xd4] ss:$24 sps:$4 sm:$0xff]  }
 0x11c   : > { %2203 = vmatprep.mubr.bf16.mxu1 %v5419_v9  ;;  %4179 = vmatprep.subr.bf16.mxu0 %v4836_v50  ;;  %v4853_v9 = vld [vmem:[#allocation5 + $0x1e8] ss:$12 sps:$4 sm:$0xff]   ;;  %v4875_v50 = vld [vmem:[#allocation5 + $0x1a0] ss:$12 sps:$4 sm:$0xff]  }
 0x11d   : > { %4255 = vmatprep.subr.bf16.mxu1 %v4838_v53  ;;  %v4879_v53 = vld [vmem:[#allocation5 + $0x320] ss:$12 sps:$4 sm:$0xff]  }
 0x11e   : > { %4180 = vmatpush3.bf16.msra.mxu0 %v4837_v54  ;;  %v4881_v54 = vld [vmem:[#allocation5 + $0x248] ss:$12 sps:$4 sm:$0xff]  }
 0x11f   : > { %4256 = vmatpush3.bf16.msra.mxu1 %v4839_v55  ;;  %4181 = vmatprep.subr.bf16.mxu0 %v4843_v58  ;;  %v4887_v55 = vld [vmem:[#allocation5 + $0x308] ss:$12 sps:$4 sm:$0xff]  }
 0x120   : > { %4257 = vmatprep.subr.bf16.mxu1 %v4845_v61  ;;  %v5609_v58 = vld [vmem:[%s5395_s19 + $0xd0] ss:$24 sps:$4 sm:$0xff]   ;;  %v5612_v61 = vld [vmem:[%s5395_s19 + $0x104] ss:$24 sps:$4 sm:$0xff]  }
 0x121   : > { %2073 = vmatmul.mubr.bf16.gmra.mxu0 %v5579_v49 }
 0x122   : > { %2204 = vmatmul.mubr.bf16.gmra.mxu1 %v5427_v15  ;;  %2082 = vmatprep.mubr.bf16.mxu0 %v5582_v62  ;;  %v4867_v15 = vld [vmem:[#allocation5 + $0x278] ss:$12 sps:$4 sm:$0xff]  }
 0x123   : > { %2211 = vmatprep.mubr.bf16.mxu1 %v5434_v19  ;;  %4182 = vmatpush3.bf16.msra.mxu0 %v4844_v63  ;;  %v4868_v19 = vld [vmem:[#allocation5 + $0x1b8] ss:$12 sps:$4 sm:$0xff]   ;;  %v4888_v63 = vld [vmem:[#allocation8 + $0x78] sm:$0xff]  }
 0x124   : > { %4258 = vmatpush3.bf16.msra.mxu1 %v4848_v0  ;;  %4183 = vmatprep.subr.bf16.mxu0 %v4850_v3  ;;  %v5632_v0 = vld [vmem:[%s5395_s19 + $0x164] ss:$24 sps:$4 sm:$0xff]   ;;  %v4890_v3 = vld [vmem:[#allocation8 + $0x70] sm:$0xff]  }
 0x125   : > { %4259 = vmatprep.subr.bf16.mxu1 %v4855_v1  ;;  %v4961_v1 = vld [vmem:[%s5395_s19 + $0x8] ss:$24 sps:$4 sm:$0xff]  }
 0x127   : > { %4184 = vmatpush3.bf16.msra.mxu0 %v4853_v9  ;;  %v4894_v9 = vld [vmem:[#allocation8 + $0x60] sm:$0xff]  }
 0x128   : > { %4260 = vmatpush3.bf16.msra.mxu1 %v4856_v2  ;;  %4185 = vmatprep.subr.bf16.mxu0 %v4860_v6  ;;  %v4901_v2 = vld [vmem:[#allocation8 + $0x8] sm:$0xff]   ;;  %v4902_v6 = vld [vmem:[#allocation8 + $0x40] sm:$0xff]  }
 0x129   : > { %4261 = vmatprep.subr.bf16.mxu1 %v4862_v7  ;;  %2083 = vmatmul.mubr.bf16.gmra.mxu0 %v5589_v12  ;;  %v4903_v7 = vld [vmem:[#allocation8] sm:$0xff]  }
 0x12a   : > { %2212 = vmatmul.mubr.bf16.gmra.mxu1 %v5444_v25  ;;  %2092 = vmatprep.mubr.bf16.mxu0 %v5592_v13  ;;  %v4886_v25 = vld [vmem:[#allocation5 + $0x3c8] ss:$12 sps:$4 sm:$0xff]  }
 0x12b   : > { %2219 = vmatprep.mubr.bf16.mxu1 %v5450_v30  ;;  %4186 = vmatpush3.bf16.msra.mxu0 %v4861_v16  ;;  %v4884_v30 = vld [vmem:[#allocation5 + $0x188] ss:$12 sps:$4 sm:$0xff]  }
 0x12c   : > { %4262 = vmatpush3.bf16.msra.mxu1 %v4863_v21  ;;  %4187 = vmatprep.subr.bf16.mxu0 %v4867_v15 }
 0x12d   : > { %4263 = vmatprep.subr.bf16.mxu1 %v4869_v24 }
 0x12f   : > { %4188 = vmatpush3.bf16.msra.mxu0 %v4868_v19 }
 0x130   : > { %4264 = vmatpush3.bf16.msra.mxu1 %v4870_v26  ;;  %4189 = vmatprep.subr.bf16.mxu0 %v4874_v32 }
 0x131   : > { %4265 = vmatprep.subr.bf16.mxu1 %v4876_v33  ;;  %2093 = vmatmul.mubr.bf16.gmra.mxu0 %v5599_v44 }
 0x132   : > { %2220 = vmatmul.mubr.bf16.gmra.mxu1 %v5460_v36  ;;  %2102 = vmatprep.mubr.bf16.mxu0 %v5602_v45  ;;  %v5619_v36 = vld [vmem:[%s5395_s19 + $0x100] ss:$24 sps:$4 sm:$0xff]  }
 0x133   : > { %2227 = vmatprep.mubr.bf16.mxu1 %v5466_v41  ;;  %4190 = vmatpush3.bf16.msra.mxu0 %v4875_v50  ;;  %v5622_v41 = vld [vmem:[%s5395_s19 + $0x134] ss:$24 sps:$4 sm:$0xff]  }
 0x134   : > { %4266 = vmatpush3.bf16.msra.mxu1 %v4879_v53  ;;  %4191 = vmatprep.subr.bf16.mxu0 %v4881_v54 }
 0x135   : > { %4267 = vmatprep.subr.bf16.mxu1 %v4886_v25 }
 0x137   : > { %4192 = vmatpush3.bf16.msra.mxu0 %v4884_v30 }
 0x138   : > { %4268 = vmatpush3.bf16.msra.mxu1 %v4887_v55  ;;  %4329 = vmatprep.subr.bf16.mxu0 %v4888_v63 }
 0x139   : > { %2103 = vmatmul.mubr.bf16.gmra.mxu0 %v5609_v58 }
 0x13a   : > { %2228 = vmatmul.mubr.bf16.gmra.mxu1 %v5476_v46  ;;  %2112 = vmatprep.mubr.bf16.mxu0 %v5612_v61  ;;  %v5629_v46 = vld [vmem:[%s5395_s19 + $0x130] ss:$24 sps:$4 sm:$0xff]  }
 0x13b   : > { %2235 = vmatprep.mubr.bf16.mxu1 %v5482_v51  ;;  %v5639_v51 = vld [vmem:[%s5395_s19 + $0x160] ss:$24 sps:$4 sm:$0xff]  }
 0x141   : > { %2113 = vmatmul.mubr.bf16.gmra.mxu0 %v5619_v36 }
 0x142   : > { %2236 = vmatmul.mubr.bf16.gmra.mxu1 %v5492_v56  ;;  %2122 = vmatprep.mubr.bf16.mxu0 %v5622_v41  ;;  %v5642_v56 = vld [vmem:[%s5395_s19 + $0x194] ss:$24 sps:$4 sm:$0xff]  }
 0x143   : > { %2243 = vmatprep.mubr.bf16.mxu1 %v5498_v59  ;;  %v5649_v59 = vld [vmem:[%s5395_s19 + $0x190] ss:$24 sps:$4 sm:$0xff]  }
 0x149   : > { %2123 = vmatmul.mubr.bf16.gmra.mxu0 %v5629_v46 }
 0x14a   : > { %2244 = vmatmul.mubr.bf16.gmra.mxu1 %v5508_v4  ;;  %2132 = vmatprep.mubr.bf16.mxu0 %v5632_v0  ;;  %v5652_v4 = vld [vmem:[%s5395_s19 + $0x1c4] ss:$24 sps:$4 sm:$0xff]  }
 0x14b   : > { %2251 = vmatprep.mubr.bf16.mxu1 %v5514_v8  ;;  %v5659_v8 = vld [vmem:[%s5395_s19 + $0x1c0] ss:$24 sps:$4 sm:$0xff]  }
 0x151   : > { %2133 = vmatmul.mubr.bf16.gmra.mxu0 %v5639_v51 }
 0x152   : > { %2252 = vmatmul.mubr.bf16.gmra.mxu1 %v5524_v14  ;;  %2142 = vmatprep.mubr.bf16.mxu0 %v5642_v56  ;;  %v4960_v14 = vld [vmem:[%s5395_s19 + $0xc] ss:$24 sps:$4 sm:$0xff]  }
 0x153   : > { %2259 = vmatprep.mubr.bf16.mxu1 %v5530_v22  ;;  %v4889_v22 = vld [vmem:[#allocation8 + $0x38] sm:$0xff]  }
 0x159   : > { %2143 = vmatmul.mubr.bf16.gmra.mxu0 %v5649_v59 }
 0x15a   : > { %2260 = vmatmul.mubr.bf16.gmra.mxu1 %v5540_v28  ;;  %2152 = vmatprep.mubr.bf16.mxu0 %v5652_v4  ;;  %v4891_v28 = vld [vmem:[#allocation8 + $0x30] sm:$0xff]  }
 0x15b   : > { %2267 = vmatprep.mubr.bf16.mxu1 %v5546_v34  ;;  %v4892_v34 = vld [vmem:[#allocation8 + $0x68] sm:$0xff]  }
 0x161   : > { %2153 = vmatmul.mubr.bf16.gmra.mxu0 %v5659_v8 }
 0x162   : > { %2268 = vmatmul.mubr.bf16.gmra.mxu1 %v5556_v38  ;;  %2308 = vmatprep.mubr.bf16.mxu0 %v4960_v14  ;;  %v4893_v38 = vld [vmem:[#allocation8 + $0x28] sm:$0xff]  }
 0x163   : > { %2421 = vmatprep.mubr.bf16.mxu1 %v5562_v40  ;;  %v4896_v40 = vld [vmem:[#allocation8 + $0x58] sm:$0xff]  }
 0x169   : > { %2309 = vmatmul.mubr.bf16.vlgmr.msra.gmra.mxu0 %v4961_v1 }
 0x16a   : > { %2422 = vmatmul.mubr.bf16.vlgmr.msra.gmra.mxu1 %v5569_v43  ;;  %2316 = vmatprep.mubr.bf16.mxu0 %v5422_v10  ;;  %v4895_v10 = vld [vmem:[#allocation8 + $0x20] sm:$0xff]   ;;  %v4897_v43 = vld [vmem:[#allocation8 + $0x18] sm:$0xff]  }
 0x16b   : > { %2429 = vmatprep.mubr.bf16.mxu1 %v5572_v48  ;;  %4330 = vmatpush3.bf16.msra.mxu0 %v4889_v22  ;;  %v4898_v48 = vld [vmem:[#allocation8 + $0x50] sm:$0xff]   ;;  %v4904_v22 = vld [vmem:[#allocation8 + $0xb8] sm:$0xff]  }
 0x16c   : > { %4331 = vmatprep.subr.bf16.mxu0 %v4890_v3  ;;  %4441 = vmatprep.subr.bf16.mxu1 %v4904_v22 }
 0x16d   : > { %4442 = vmatpush3.bf16.msra.mxu1 %v4904_v22 }
 0x16f   : > { %4332 = vmatpush3.bf16.msra.mxu0 %v4891_v28 }
 0x170   : > { %4333 = vmatprep.subr.bf16.mxu0 %v4892_v34 }
 0x171   : > { %2317 = vmatmul.mubr.bf16.gmra.mxu0 %v5431_v17  ;;  %v681_v17 = vlaneseq }
 0x172   : > { %2430 = vmatmul.mubr.bf16.gmra.mxu1 %v5579_v49  ;;  %2324 = vmatprep.mubr.bf16.mxu0 %v5437_v20  ;;  %v4899_v20 = vld [vmem:[#allocation8 + $0x10] sm:$0xff]   ;;  %v4900_v49 = vld [vmem:[#allocation8 + $0x48] sm:$0xff]  }
 0x173   : > { %2437 = vmatprep.mubr.bf16.mxu1 %v5582_v62  ;;  %4334 = vmatpush3.bf16.msra.mxu0 %v4893_v38  ;;  %v5677_v62 = vshrl.u32 %v681_v17, 7 }
 0x174   : > { %4335 = vmatprep.subr.bf16.mxu0 %v4894_v9 }
 0x177   : > { %4336 = vmatpush3.bf16.msra.mxu0 %v4895_v10 }
 0x178   : > { %4337 = vmatprep.subr.bf16.mxu0 %v4896_v40 }
 0x179   : > { %2325 = vmatmul.mubr.bf16.gmra.mxu0 %v5447_v27  ;;  %v683_v27 = vsub.s32 0, %v5677_v62 }
 0x17a   : > { %2438 = vmatmul.mubr.bf16.gmra.mxu1 %v5589_v12  ;;  %2332 = vmatprep.mubr.bf16.mxu0 %v5453_v31  ;;  %v5684_v31 = vld [vmem:[#allocation7] sm:$0x7]  ;;  %v687_v12 = vsub.s32 1, %v5677_v62 }
 0x17b   : > { %2445 = vmatprep.mubr.bf16.mxu1 %v5592_v13  ;;  %4338 = vmatpush3.bf16.msra.mxu0 %v4897_v43  ;;  %6377 = vst [vmem:[#allocation18_spill] sm:$0xff] %v5684_v31  ;;  %v5688_v13 = vrot.slane %v5684_v31, %v683_v27 }
 0x17c   : > { %4339 = vmatprep.subr.bf16.mxu0 %v4898_v48 }
 0x17f   : > { %4340 = vmatpush3.bf16.msra.mxu0 %v4899_v20 }
 0x180   : > { %4341 = vmatprep.subr.bf16.mxu0 %v4900_v49 }
 0x181   : > { %2333 = vmatmul.mubr.bf16.gmra.mxu0 %v5463_v37  ;;  %v5691_v37 = vrot.slane %v5684_v31, %v687_v12 }
 0x182   : > { %2446 = vmatmul.mubr.bf16.gmra.mxu1 %v5599_v44  ;;  %2340 = vmatprep.mubr.bf16.mxu0 %v5469_v42 }
 0x183   : > { %2453 = vmatprep.mubr.bf16.mxu1 %v5602_v45  ;;  %4342 = vmatpush3.bf16.msra.mxu0 %v4901_v2 }
 0x184   : > { %4343 = vmatprep.subr.bf16.mxu0 %v4902_v6 }
 0x187   : > { %4344 = vmatpush3.bf16.msra.mxu0 %v4903_v7 }
 0x189   : > { %v1798_v16 = vpop.f32.mrf.mxu0  ;;  %2341 = vmatmul.mubr.bf16.gmra.mxu0 %v5479_v47 }
 0x18a   : > { %v1931_v42 = vpop.f32.mrf.mxu1  ;;  %2454 = vmatmul.mubr.bf16.gmra.mxu1 %v5609_v58  ;;  %v1799_v21 = vadd.f32 %v1798_v16, %v5688_v13  ;;  %2348 = vmatprep.mubr.bf16.mxu0 %v5485_v52 }
 0x18b   : > { %2461 = vmatprep.mubr.bf16.mxu1 %v5612_v61  ;;  %v1800_v15 = vpop.f32.mrf.mxu0 }
 0x18c   : > { %v1933_v24 = vpop.f32.mrf.mxu1  ;;  %v5698_v19 = vadd.f32 %v1931_v42, %v1799_v21  ;;  %v1801_v26 = vadd.f32 %v1800_v15, %v5691_v37 }
 0x18d   : > { %v1802_v32 = vpop.f32.mrf.mxu0 }
 0x18e   : > { %v1935_v33 = vpop.f32.mrf.mxu1  ;;  %v5701_v44 = vadd.f32 %v1933_v24, %v1801_v26  ;;  %v1803_v47 = vadd.f32 %v1802_v32, %v5688_v13 }
 0x18f   : > { %v1804_v45 = vpop.f32.mrf.mxu0 }
 0x190   : > { %v1937_v50 = vpop.f32.mrf.mxu1  ;;  %v5704_v53 = vadd.f32 %v1935_v33, %v1803_v47  ;;  %v1805_v52 = vadd.f32 %v1804_v45, %v5691_v37 }
 0x191   : > { %v1808_v54 = vpop.f32.mrf.mxu0  ;;  %2349 = vmatmul.mubr.bf16.gmra.mxu0 %v5495_v57 }
 0x192   : > { %v1941_v25 = vpop.f32.mrf.mxu1  ;;  %2462 = vmatmul.mubr.bf16.gmra.mxu1 %v5619_v36  ;;  %v5709_v30 = vadd.f32 %v1937_v50, %v1805_v52  ;;  %v1809_v55 = vadd.f32 %v1808_v54, %v5688_v13  ;;  %2356 = vmatprep.mubr.bf16.mxu0 %v5501_v60 }
 0x193   : > { %2469 = vmatprep.mubr.bf16.mxu1 %v5622_v41  ;;  %v1810_v58 = vpop.f32.mrf.mxu0 }
 0x194   : > { %v1943_v61 = vpop.f32.mrf.mxu1  ;;  %v5714_v63 = vadd.f32 %v1941_v25, %v1809_v55  ;;  %v1811_v14 = vadd.f32 %v1810_v58, %v5691_v37 }
 0x195   : > { %v1812_v3 = vpop.f32.mrf.mxu0 }
 0x196   : > { %v1945_v1 = vpop.f32.mrf.mxu1  ;;  %v5717_v57 = vadd.f32 %v1943_v61, %v1811_v14  ;;  %v1813_v36 = vadd.f32 %v1812_v3, %v5688_v13  ;;  %v4907_v61 = vld [vmem:[#allocation8 + $0xa0] sm:$0xff]  }
 0x197   : > { %v1814_v28 = vpop.f32.mrf.mxu0 }
 0x198   : > { %v1947_v34 = vpop.f32.mrf.mxu1  ;;  %v5720_v60 = vadd.f32 %v1945_v1, %v1813_v36  ;;  %v1815_v41 = vadd.f32 %v1814_v28, %v5691_v37  ;;  %v4908_v1 = vld [vmem:[#allocation8 + $0x98] sm:$0xff]  }
 0x199   : > { %v1818_v38 = vpop.f32.mrf.mxu0  ;;  %2357 = vmatmul.mubr.bf16.gmra.mxu0 %v5511_v5 }
 0x19a   : > { %v1951_v9 = vpop.f32.mrf.mxu1  ;;  %2470 = vmatmul.mubr.bf16.gmra.mxu1 %v5629_v46  ;;  %v5725_v10 = vadd.f32 %v1947_v34, %v1815_v41  ;;  %v1819_v40 = vadd.f32 %v1818_v38, %v5688_v13  ;;  %2364 = vmatprep.mubr.bf16.mxu0 %v5517_v11  ;;  %v4905_v46 = vld [vmem:[#allocation8 + $0xb0] sm:$0xff]  }
 0x19b   : > { %2477 = vmatprep.mubr.bf16.mxu1 %v5632_v0  ;;  %v1820_v43 = vpop.f32.mrf.mxu0  ;;  %4443 = vmatprep.subr.bf16.mxu1 %v4905_v46 }
 0x19c   : > { %v1953_v48 = vpop.f32.mrf.mxu1  ;;  %v5730_v17 = vadd.f32 %v1951_v9, %v1819_v40  ;;  %v1821_v20 = vadd.f32 %v1820_v43, %v5691_v37  ;;  %4444 = vmatpush3.bf16.msra.mxu1 %v4905_v46  ;;  %v4909_v43 = vld [vmem:[#allocation8 + $0x90] sm:$0xff]   ;;  %v4910_v46 = vld [vmem:[#allocation8 + $0x88] sm:$0xff]  }
 0x19d   : > { %v1822_v49 = vpop.f32.mrf.mxu0 }
 0x19e   : > { %v1955_v2 = vpop.f32.mrf.mxu1  ;;  %v5733_v6 = vadd.f32 %v1953_v48, %v1821_v20  ;;  %v1823_v5 = vadd.f32 %v1822_v49, %v5688_v13 }
 0x19f   : > { %v5736_v27 = vpop.f32.mrf.mxu0 }
 0x1a0   : > { %v5738_v7 = vpop.f32.mrf.mxu1  ;;  %v5740_v11 = vadd.f32 %v1955_v2, %v1823_v5 }
 0x1a1   : > { %v1828_v0 = vpop.f32.mrf.mxu0  ;;  %2365 = vmatmul.mubr.bf16.gmra.mxu0 %v5527_v18 }
 0x1a2   : > { %v1961_v12 = vpop.f32.mrf.mxu1  ;;  %2478 = vmatmul.mubr.bf16.gmra.mxu1 %v5639_v51  ;;  %v1829_v16 = vadd.f32 %v1828_v0, %v5688_v13  ;;  %2372 = vmatprep.mubr.bf16.mxu0 %v5533_v23 }
 0x1a3   : > { %2485 = vmatprep.mubr.bf16.mxu1 %v5642_v56  ;;  %v1830_v42 = vpop.f32.mrf.mxu0  ;;  %v4906_v56 = vld [vmem:[#allocation8 + $0xa8] sm:$0xff]  }
 0x1a4   : > { %v1963_v21 = vpop.f32.mrf.mxu1  ;;  %v5747_v15 = vadd.f32 %v1961_v12, %v1829_v16  ;;  %v1831_v24 = vadd.f32 %v1830_v42, %v5691_v37  ;;  %4445 = vmatprep.subr.bf16.mxu1 %v4906_v56 }
 0x1a5   : > { %v1832_v26 = vpop.f32.mrf.mxu0  ;;  %4446 = vmatpush3.bf16.msra.mxu1 %v4906_v56 }
 0x1a6   : > { %v1965_v32 = vpop.f32.mrf.mxu1  ;;  %v5750_v33 = vadd.f32 %v1963_v21, %v1831_v24  ;;  %v1833_v18 = vadd.f32 %v1832_v26, %v5688_v13  ;;  %4447 = vmatprep.subr.bf16.mxu1 %v4907_v61 }
 0x1a7   : > { %v5753_v51 = vpop.f32.mrf.mxu0 }
 0x1a8   : > { %v5755_v47 = vpop.f32.mrf.mxu1  ;;  %v5757_v23 = vadd.f32 %v1965_v32, %v1833_v18  ;;  %v4911_v32 = vld [vmem:[#allocation8 + $0x80] sm:$0xff]  }
 0x1a9   : > { %v1838_v45 = vpop.f32.mrf.mxu0  ;;  %2373 = vmatmul.mubr.bf16.gmra.mxu0 %v5543_v29  ;;  %4448 = vmatpush3.bf16.msra.mxu1 %v4907_v61 }
 0x1aa   : > { %v1971_v50 = vpop.f32.mrf.mxu1  ;;  %2486 = vmatmul.mubr.bf16.gmra.mxu1 %v5649_v59  ;;  %v1839_v52 = vadd.f32 %v1838_v45, %v5688_v13  ;;  %2380 = vmatprep.mubr.bf16.mxu0 %v5549_v35 }
 0x1ab   : > { %2493 = vmatprep.mubr.bf16.mxu1 %v5652_v4  ;;  %v1840_v54 = vpop.f32.mrf.mxu0  ;;  %4449 = vmatprep.subr.bf16.mxu1 %v4908_v1 }
 0x1ac   : > { %v1973_v25 = vpop.f32.mrf.mxu1  ;;  %v5764_v55 = vadd.f32 %v1971_v50, %v1839_v52  ;;  %v1841_v58 = vadd.f32 %v1840_v54, %v5691_v37 }
 0x1ad   : > { %v1842_v14 = vpop.f32.mrf.mxu0  ;;  %4450 = vmatpush3.bf16.msra.mxu1 %v4908_v1 }
 0x1ae   : > { %v1975_v22 = vpop.f32.mrf.mxu1  ;;  %v5767_v29 = vadd.f32 %v1973_v25, %v1841_v58  ;;  %v1843_v59 = vadd.f32 %v1842_v14, %v5688_v13  ;;  %4451 = vmatprep.subr.bf16.mxu1 %v4909_v43 }
 0x1af   : > { %v5770_v3 = vpop.f32.mrf.mxu0 }
 0x1b0   : > { %v5772_v35 = vpop.f32.mrf.mxu1  ;;  %v5774_v4 = vadd.f32 %v1975_v22, %v1843_v59 }
 0x1b1   : > { %v1848_v36 = vpop.f32.mrf.mxu0  ;;  %2381 = vmatmul.mubr.bf16.gmra.mxu0 %v5559_v39  ;;  %4452 = vmatpush3.bf16.msra.mxu1 %v4909_v43 }
 0x1b2   : > { %v1981_v28 = vpop.f32.mrf.mxu1  ;;  %2494 = vmatmul.mubr.bf16.gmra.mxu1 %v5659_v8  ;;  %v1849_v34 = vadd.f32 %v1848_v36, %v5688_v13  ;;  %4453 = vmatprep.subr.bf16.mxu1 %v4910_v46 }
 0x1b3   : > { %v1850_v41 = vpop.f32.mrf.mxu0 }
 0x1b4   : > { %v1983_v38 = vpop.f32.mrf.mxu1  ;;  %v5779_v9 = vadd.f32 %v1981_v28, %v1849_v34  ;;  %v1851_v40 = vadd.f32 %v1850_v41, %v5691_v37 }
 0x1b5   : > { %v1852_v48 = vpop.f32.mrf.mxu0  ;;  %4454 = vmatpush3.bf16.msra.mxu1 %v4910_v46 }
 0x1b6   : > { %v1985_v20 = vpop.f32.mrf.mxu1  ;;  %v5782_v49 = vadd.f32 %v1983_v38, %v1851_v40  ;;  %v1853_v2 = vadd.f32 %v1852_v48, %v5688_v13  ;;  %4455 = vmatprep.subr.bf16.mxu1 %v4911_v32 }
 0x1b7   : > { %v5785_v39 = vpop.f32.mrf.mxu0 }
 0x1b8   : > { %v5787_v8 = vpop.f32.mrf.mxu1  ;;  %v5789_v5 = vadd.f32 %v1985_v20, %v1853_v2 }
 0x1b9   : > { %v1858_v0 = vpop.f32.mrf.mxu0  ;;  %4456 = vmatpush3.bf16.msra.mxu1 %v4911_v32 }
 0x1ba   : > { %v1991_v12 = vpop.f32.mrf.mxu1  ;;  %v1859_v16 = vadd.f32 %v1858_v0, %v5688_v13 }
 0x1bb   : > { %v1860_v42 = vpop.f32.mrf.mxu0 }
 0x1bc   : > { %v1993_v21 = vpop.f32.mrf.mxu1  ;;  %v5792_v24 = vadd.f32 %v1991_v12, %v1859_v16  ;;  %v1861_v26 = vadd.f32 %v1860_v42, %v5691_v37 }
 0x1bd   : > { %v1862_v18 = vpop.f32.mrf.mxu0 }
 0x1be   : > { %v1995_v56 = vpop.f32.mrf.mxu1  ;;  %v5795_v45 = vadd.f32 %v1993_v21, %v1861_v26  ;;  %v1863_v50 = vadd.f32 %v1862_v18, %v5688_v13 }
 0x1bf   : > { %v5798_v52 = vpop.f32.mrf.mxu0 }
 0x1c0   : > { %v5800_v54 = vpop.f32.mrf.mxu1  ;;  %v5802_v25 = vadd.f32 %v1995_v56, %v1863_v50 }
 0x1c1   : > { %v1868_v58 = vpop.f32.mrf.mxu0 }
 0x1c2   : > { %v2001_v61 = vpop.f32.mrf.mxu1  ;;  %v1869_v14 = vadd.f32 %v1868_v58, %v5688_v13 }
 0x1c3   : > { %v1870_v22 = vpop.f32.mrf.mxu0 }
 0x1c4   : > { %v2003_v59 = vpop.f32.mrf.mxu1  ;;  %v5805_v1 = vadd.f32 %v2001_v61, %v1869_v14  ;;  %v1871_v36 = vadd.f32 %v1870_v22, %v5691_v37 }
 0x1c5   : > { %v1872_v28 = vpop.f32.mrf.mxu0 }
 0x1c6   : > { %v2005_v34 = vpop.f32.mrf.mxu1  ;;  %v5808_v41 = vadd.f32 %v2003_v59, %v1871_v36  ;;  %v1873_v38 = vadd.f32 %v1872_v28, %v5688_v13 }
 0x1c7   : > { %v5811_v40 = vpop.f32.mrf.mxu0 }
 0x1c8   : > { %v5813_v43 = vpop.f32.mrf.mxu1  ;;  %v5815_v48 = vadd.f32 %v2005_v34, %v1873_v38 }
 0x1c9   : > { %v1878_v20 = vpop.f32.mrf.mxu0 }
 0x1ca   : > { %v2011_v2 = vpop.f32.mrf.mxu1  ;;  %v1879_v46 = vadd.f32 %v1878_v20, %v5688_v13 }
 0x1cb   : > { %v1880_v0 = vpop.f32.mrf.mxu0 }
 0x1cc   : > { %v2013_v12 = vpop.f32.mrf.mxu1  ;;  %v5818_v16 = vadd.f32 %v2011_v2, %v1879_v46  ;;  %v1881_v42 = vadd.f32 %v1880_v0, %v5691_v37 }
 0x1cd   : > { %v1882_v21 = vpop.f32.mrf.mxu0 }
 0x1ce   : > { %v2015_v26 = vpop.f32.mrf.mxu1  ;;  %v5821_v32 = vadd.f32 %v2013_v12, %v1881_v42  ;;  %v1883_v18 = vadd.f32 %v1882_v21, %v5688_v13 }
 0x1cf   : > { %v5824_v56 = vpop.f32.mrf.mxu0 }
 0x1d0   : > { %v5826_v50 = vpop.f32.mrf.mxu1  ;;  %v5828_v58 = vadd.f32 %v2015_v26, %v1883_v18 }
 0x1d1   : > { %v1888_v61 = vpop.f32.mrf.mxu0 }
 0x1d2   : > { %v2021_v14 = vpop.f32.mrf.mxu1  ;;  %v1889_v22 = vadd.f32 %v1888_v61, %v5688_v13 }
 0x1d3   : > { %v1890_v59 = vpop.f32.mrf.mxu0 }
 0x1d4   : > { %v2023_v36 = vpop.f32.mrf.mxu1  ;;  %v5831_v28 = vadd.f32 %v2021_v14, %v1889_v22  ;;  %v1891_v34 = vadd.f32 %v1890_v59, %v5691_v37 }
 0x1d5   : > { %v1892_v38 = vpop.f32.mrf.mxu0 }
 0x1d6   : > { %6378 = vst [vmem:[#allocation19_spill] sm:$0xff] %v5831_v28  ;;  %v2025_v20 = vpop.f32.mrf.mxu1  ;;  %v5834_v2 = vadd.f32 %v2023_v36, %v1891_v34  ;;  %v1893_v46 = vadd.f32 %v1892_v38, %v5688_v13 }
 0x1d7   : > { %v5837_v0 = vpop.f32.mrf.mxu0 }
 0x1d8   : > { %6379 = vst [vmem:[#allocation20_spill] sm:$0xff] %v5834_v2  ;;  %v5839_v12 = vpop.f32.mrf.mxu1  ;;  %v5841_v42 = vadd.f32 %v2025_v20, %v1893_v46 }
 0x1d9   : > { %6380 = vst [vmem:[#allocation21_spill] sm:$0xff] %v5839_v12  ;;  %v2064_v21 = vpop.f32.mrf.mxu0 }
 0x1da   : > { %6381 = vst [vmem:[#allocation22_spill] sm:$0xff] %v5841_v42  ;;  %v4117_v26 = vpop.f32.mrf.mxu1  ;;  %v2065_v14 = vadd.f32 %v2064_v21, %v5698_v19 }
 0x1db   : > { %v2066_v18 = vpop.f32.mrf.mxu0 }
 0x1dc   : > { %v4118_v61 = vpop.f32.mrf.mxu1  ;;  %v2067_v36 = vadd.f32 %v2066_v18, %v5701_v44  ;;  %v2502_v20 = vmax.f32 %v2065_v14, 0.0 }
 0x1dd   : > { %v5844_v22 = vadd.f32 %v4118_v61, %v4117_v26  ;;  %v2068_v59 = vpop.f32.mrf.mxu0 }
 0x1de   : > { %v5846_v31 = vpop.f32.mrf.mxu1  ;;  %v2069_v13 = vadd.f32 %v2068_v59, %v5704_v53  ;;  %v2503_v28 = vmax.f32 %v2067_v36, 0.0 }
 0x1df   : > { %6382 = vst [vmem:[#allocation23_spill] sm:$0xff] %v5844_v22  ;;  %6383 = vst [vmem:[#allocation24_spill] sm:$0xff] %v5846_v31  ;;  %v2070_v34 = vpop.f32.mrf.mxu0 }
 0x1e0   : > { %v5850_v38 = vpop.f32.mrf.mxu1  ;;  %v2505_v46 = vmax.f32 %v2069_v13, 0.0  ;;  %v2071_v42 = vadd.f32 %v2070_v34, %v5709_v30 }
 0x1e1   : > { %v2074_v2 = vpop.f32.mrf.mxu0 }
 0x1e2   : > { %v4123_v12 = vpop.f32.mrf.mxu1  ;;  %v2562_v19 = vpack.c.bf16 %v2505_v46, %v2502_v20  ;;  %v2506_v21 = vmax.f32 %v2071_v42, 0.0  ;;  %v2075_v31 = vadd.f32 %v2074_v2, %v5714_v63 }
 0x1e3   : > { %v2076_v26 = vpop.f32.mrf.mxu0 }
 0x1e4   : > { %v4124_v61 = vpop.f32.mrf.mxu1  ;;  %v2563_v44 = vpack.c.bf16 %v2506_v21, %v2503_v28  ;;  %v2077_v14 = vadd.f32 %v2076_v26, %v5717_v57  ;;  %v2508_v42 = vmax.f32 %v2075_v31, 0.0  ;;  %v1825_v28 = vadd.f32 %v5736_v27, %v5691_v37 }
 0x1e5   : > { %v5854_v22 = vadd.f32 %v4124_v61, %v4123_v12  ;;  %v2078_v53 = vpop.f32.mrf.mxu0 }
 0x1e6   : > { %v5856_v18 = vpop.f32.mrf.mxu1  ;;  %v2079_v59 = vadd.f32 %v2078_v53, %v5720_v60  ;;  %2823 = vmatprep.mubr.bf16.mxu0 %v2563_v44  ;;  %v2509_v12 = vmax.f32 %v2077_v14, 0.0  ;;  %v1958_v44 = vadd.f32 %v5738_v7, %v1825_v28 }
 0x1e7   : > { %v2080_v30 = vpop.f32.mrf.mxu0  ;;  %2824 = vmatmul.mubr.bf16.vlgmr.msra.gmra.mxu0 %v2562_v19 }
 0x1e8   : > { %v5860_v13 = vpop.f32.mrf.mxu1  ;;  %v2511_v36 = vmax.f32 %v2079_v59, 0.0  ;;  %v2081_v34 = vadd.f32 %v2080_v30, %v5725_v10 }
 0x1e9   : > { %v2084_v63 = vpop.f32.mrf.mxu0 }
 0x1ea   : > { %v4129_v2 = vpop.f32.mrf.mxu1  ;;  %v2565_v20 = vpack.c.bf16 %v2511_v36, %v2508_v42  ;;  %v2512_v46 = vmax.f32 %v2081_v34, 0.0  ;;  %v2085_v60 = vadd.f32 %v2084_v63, %v5730_v17  ;;  %v1835_v63 = vadd.f32 %v5753_v51, %v5691_v37 }
 0x1eb   : > { %v2086_v57 = vpop.f32.mrf.mxu0 }
 0x1ec   : > { %v4130_v21 = vpop.f32.mrf.mxu1  ;;  %v2566_v61 = vpack.c.bf16 %v2512_v46, %v2509_v12  ;;  %v2087_v10 = vadd.f32 %v2086_v57, %v5733_v6  ;;  %v2514_v59 = vmax.f32 %v2085_v60, 0.0  ;;  %v1968_v60 = vadd.f32 %v5755_v47, %v1835_v63 }
 0x1ed   : > { %v5866_v26 = vadd.f32 %v4130_v21, %v4129_v2  ;;  %v2088_v19 = vpop.f32.mrf.mxu0 }
 0x1ee   : > { %v4132_v31 = vpop.f32.mrf.mxu1  ;;  %v2089_v53 = vadd.f32 %v2088_v19, %v5740_v11  ;;  %2831 = vmatprep.mubr.bf16.mxu0 %v2566_v61  ;;  %v2515_v2 = vmax.f32 %v2087_v10, 0.0 }
 0x1ef   : > { %v2090_v27 = vpop.f32.mrf.mxu0  ;;  %2832 = vmatmul.mubr.bf16.gmra.mxu0 %v2565_v20 }
 0x1f0   : > { %v4133_v14 = vpop.f32.mrf.mxu1  ;;  %v2517_v30 = vmax.f32 %v2089_v53, 0.0  ;;  %v2091_v42 = vadd.f32 %v2090_v27, %v1958_v44 }
 0x1f1   : > { %v5871_v36 = vadd.f32 %v4133_v14, %v4132_v31  ;;  %v2094_v17 = vpop.f32.mrf.mxu0 }
 0x1f2   : > { %v4135_v34 = vpop.f32.mrf.mxu1  ;;  %v2568_v7 = vpack.c.bf16 %v2517_v30, %v2514_v59  ;;  %v2518_v28 = vmax.f32 %v2091_v42, 0.0  ;;  %v2095_v46 = vadd.f32 %v2094_v17, %v5747_v15  ;;  %v1845_v59 = vadd.f32 %v5770_v3, %v5691_v37 }
 0x1f3   : > { %v2096_v6 = vpop.f32.mrf.mxu0 }
 0x1f4   : > { %v4136_v12 = vpop.f32.mrf.mxu1  ;;  %v2569_v11 = vpack.c.bf16 %v2518_v28, %v2515_v2  ;;  %v2097_v61 = vadd.f32 %v2096_v6, %v5750_v33  ;;  %v2520_v44 = vmax.f32 %v2095_v46, 0.0  ;;  %v1978_v28 = vadd.f32 %v5772_v35, %v1845_v59 }
 0x1f5   : > { %v5876_v57 = vadd.f32 %v4136_v12, %v4135_v34  ;;  %v2098_v20 = vpop.f32.mrf.mxu0 }
 0x1f6   : > { %v4138_v21 = vpop.f32.mrf.mxu1  ;;  %v2099_v19 = vadd.f32 %v2098_v20, %v5757_v23  ;;  %2839 = vmatprep.mubr.bf16.mxu0 %v2569_v11  ;;  %v2521_v30 = vmax.f32 %v2097_v61, 0.0 }
 0x1f7   : > { %v2100_v51 = vpop.f32.mrf.mxu0  ;;  %2840 = vmatmul.mubr.bf16.gmra.mxu0 %v2568_v7 }
 0x1f8   : > { %v4139_v31 = vpop.f32.mrf.mxu1  ;;  %v2523_v10 = vmax.f32 %v2099_v19, 0.0  ;;  %v2101_v53 = vadd.f32 %v2100_v51, %v1968_v60  ;;  %v1855_v19 = vadd.f32 %v5785_v39, %v5691_v37 }
 0x1f9   : > { %v5881_v27 = vadd.f32 %v4139_v31, %v4138_v21  ;;  %v2104_v15 = vpop.f32.mrf.mxu0 }
 0x1fa   : > { %v4141_v14 = vpop.f32.mrf.mxu1  ;;  %v2571_v47 = vpack.c.bf16 %v2523_v10, %v2520_v44  ;;  %v2524_v42 = vmax.f32 %v2101_v53, 0.0  ;;  %v2105_v34 = vadd.f32 %v2104_v15, %v5764_v55  ;;  %v1988_v59 = vadd.f32 %v5787_v8, %v1855_v19 }
 0x1fb   : > { %v2106_v33 = vpop.f32.mrf.mxu0 }
 0x1fc   : > { %v4142_v17 = vpop.f32.mrf.mxu1  ;;  %v2572_v23 = vpack.c.bf16 %v2524_v42, %v2521_v30  ;;  %v2107_v6 = vadd.f32 %v2106_v33, %v5767_v29  ;;  %v2526_v46 = vmax.f32 %v2105_v34, 0.0 }
 0x1fd   : > { %v5886_v63 = vadd.f32 %v4142_v17, %v4141_v14  ;;  %v2108_v2 = vpop.f32.mrf.mxu0 }
 0x1fe   : > { %v4144_v7 = vpop.f32.mrf.mxu1  ;;  %v2109_v12 = vadd.f32 %v2108_v2, %v5774_v4  ;;  %2847 = vmatprep.mubr.bf16.mxu0 %v2572_v23  ;;  %v2527_v51 = vmax.f32 %v2107_v6, 0.0 }
 0x1ff   : > { %v2110_v3 = vpop.f32.mrf.mxu0  ;;  %2848 = vmatmul.mubr.bf16.gmra.mxu0 %v2571_v47 }
 0x200   : > { %v4145_v11 = vpop.f32.mrf.mxu1  ;;  %v2529_v20 = vmax.f32 %v2109_v12, 0.0  ;;  %v2111_v21 = vadd.f32 %v2110_v3, %v1978_v28 }
 0x201   : > { %v5891_v60 = vadd.f32 %v4145_v11, %v4144_v7  ;;  %v2114_v55 = vpop.f32.mrf.mxu0  ;;  %v1865_v7 = vadd.f32 %v5798_v52, %v5691_v37 }
 0x202   : > { %v4147_v61 = vpop.f32.mrf.mxu1  ;;  %v2574_v35 = vpack.c.bf16 %v2529_v20, %v2526_v46  ;;  %v2530_v31 = vmax.f32 %v2111_v21, 0.0  ;;  %v2115_v10 = vadd.f32 %v2114_v55, %v5779_v9 }
 0x203   : > { %v2116_v29 = vpop.f32.mrf.mxu0  ;;  %v1998_v21 = vadd.f32 %v5800_v54, %v1865_v7 }
 0x204   : > { %v4148_v44 = vpop.f32.mrf.mxu1  ;;  %v2575_v4 = vpack.c.bf16 %v2530_v31, %v2527_v51  ;;  %v2117_v30 = vadd.f32 %v2116_v29, %v5782_v49  ;;  %v2532_v33 = vmax.f32 %v2115_v10, 0.0 }
 0x205   : > { %v5896_v53 = vadd.f32 %v4148_v44, %v4147_v61  ;;  %v2118_v15 = vpop.f32.mrf.mxu0 }
 0x206   : > { %v4150_v14 = vpop.f32.mrf.mxu1  ;;  %v2119_v47 = vadd.f32 %v2118_v15, %v5789_v5  ;;  %2855 = vmatprep.mubr.bf16.mxu0 %v2575_v4  ;;  %v2533_v28 = vmax.f32 %v2117_v30, 0.0  ;;  %v1875_v4 = vadd.f32 %v5811_v40, %v5691_v37 }
 0x207   : > { %v2120_v39 = vpop.f32.mrf.mxu0  ;;  %2856 = vmatmul.mubr.bf16.gmra.mxu0 %v2574_v35 }
 0x208   : > { %v4151_v42 = vpop.f32.mrf.mxu1  ;;  %v2535_v17 = vmax.f32 %v2119_v47, 0.0  ;;  %v2121_v23 = vadd.f32 %v2120_v39, %v1988_v59 }
 0x209   : > { %v5901_v34 = vadd.f32 %v4151_v42, %v4150_v14  ;;  %v2124_v9 = vpop.f32.mrf.mxu0  ;;  %v2008_v42 = vadd.f32 %v5813_v43, %v1875_v4  ;;  %v1895_v4 = vadd.f32 %v5837_v0, %v5691_v37  ;;  %v6388_v0 = vld [vmem:[#allocation18_spill] sm:$0xff] }
 0x20a   : > { %v4153_v2 = vpop.f32.mrf.mxu1  ;;  %v2577_v8 = vpack.c.bf16 %v2535_v17, %v2532_v33  ;;  %v2536_v6 = vmax.f32 %v2121_v23, 0.0  ;;  %v2125_v3 = vadd.f32 %v2124_v9, %v5792_v24 }
 0x20b   : > { %v2126_v49 = vpop.f32.mrf.mxu0 }
 0x20c   : > { %v4154_v12 = vpop.f32.mrf.mxu1  ;;  %v2578_v5 = vpack.c.bf16 %v2536_v6, %v2533_v28  ;;  %v2127_v55 = vadd.f32 %v2126_v49, %v5795_v45  ;;  %v2538_v51 = vmax.f32 %v2125_v3, 0.0  ;;  %v1885_v6 = vadd.f32 %v5824_v56, %v5691_v37 }
 0x20d   : > { %v5906_v11 = vadd.f32 %v4154_v12, %v4153_v2  ;;  %v2128_v46 = vpop.f32.mrf.mxu0 }
 0x20e   : > { %v4156_v20 = vpop.f32.mrf.mxu1  ;;  %v2129_v61 = vadd.f32 %v2128_v46, %v5802_v25  ;;  %2863 = vmatprep.mubr.bf16.mxu0 %v2578_v5  ;;  %v2539_v10 = vmax.f32 %v2127_v55, 0.0  ;;  %v2018_v55 = vadd.f32 %v5826_v50, %v1885_v6 }
 0x20f   : > { %v2130_v52 = vpop.f32.mrf.mxu0  ;;  %2864 = vmatmul.mubr.bf16.gmra.mxu0 %v2577_v8 }
 0x210   : > { %v4157_v19 = vpop.f32.mrf.mxu1  ;;  %v2541_v35 = vmax.f32 %v2129_v61, 0.0  ;;  %v2131_v31 = vadd.f32 %v2130_v52, %v1998_v21 }
 0x211   : > { %v5911_v29 = vadd.f32 %v4157_v19, %v4156_v20  ;;  %v2134_v24 = vpop.f32.mrf.mxu0 }
 0x212   : > { %v4159_v44 = vpop.f32.mrf.mxu1  ;;  %v2580_v54 = vpack.c.bf16 %v2541_v35, %v2538_v51  ;;  %v2542_v15 = vmax.f32 %v2131_v31, 0.0  ;;  %v2135_v59 = vadd.f32 %v2134_v24, %v5805_v1 }
 0x213   : > { %v2136_v45 = vpop.f32.mrf.mxu0 }
 0x214   : > { %v4160_v14 = vpop.f32.mrf.mxu1  ;;  %v2581_v25 = vpack.c.bf16 %v2542_v15, %v2539_v10  ;;  %v2137_v33 = vadd.f32 %v2136_v45, %v5808_v41  ;;  %v2544_v9 = vmax.f32 %v2135_v59, 0.0 }
 0x215   : > { %v5916_v30 = vadd.f32 %v4160_v14, %v4159_v44  ;;  %v2138_v47 = vpop.f32.mrf.mxu0  ;;  %v6384_v14 = vld [vmem:[#allocation19_spill] sm:$0xff] }
 0x216   : > { %v4162_v39 = vpop.f32.mrf.mxu1  ;;  %v2139_v17 = vadd.f32 %v2138_v47, %v5815_v48  ;;  %2871 = vmatprep.mubr.bf16.mxu0 %v2581_v25  ;;  %v2545_v49 = vmax.f32 %v2137_v33, 0.0 }
 0x217   : > { %v2140_v40 = vpop.f32.mrf.mxu0  ;;  %2872 = vmatmul.mubr.bf16.gmra.mxu0 %v2580_v54 }
 0x218   : > { %v4163_v23 = vpop.f32.mrf.mxu1  ;;  %v2547_v2 = vmax.f32 %v2139_v17, 0.0  ;;  %v2141_v7 = vadd.f32 %v2140_v40, %v2008_v42  ;;  %v6385_v42 = vld [vmem:[#allocation21_spill] sm:$0xff]  ;;  %v6386_v17 = vld [vmem:[#allocation20_spill] sm:$0xff] }
 0x219   : > { %v5921_v28 = vadd.f32 %v4163_v23, %v4162_v39  ;;  %v2144_v1 = vpop.f32.mrf.mxu0  ;;  %v2028_v33 = vadd.f32 %v6385_v42, %v1895_v4  ;;  %v6387_v23 = vld [vmem:[#allocation22_spill] sm:$0xff] }
 0x21a   : > { %v4165_v8 = vpop.f32.mrf.mxu1  ;;  %v2583_v43 = vpack.c.bf16 %v2547_v2, %v2544_v9  ;;  %v2548_v12 = vmax.f32 %v2141_v7, 0.0  ;;  %v2145_v3 = vadd.f32 %v2144_v1, %v5818_v16 }
 0x21b   : > { %v2146_v41 = vpop.f32.mrf.mxu0 }
 0x21c   : > { %v4166_v5 = vpop.f32.mrf.mxu1  ;;  %v2584_v48 = vpack.c.bf16 %v2548_v12, %v2545_v49  ;;  %v2147_v61 = vadd.f32 %v2146_v41, %v5821_v32  ;;  %v2550_v51 = vmax.f32 %v2145_v3, 0.0  ;;  %v691_v32 = vsub.s32 2, %v5677_v62 }
 0x21d   : > { %v5926_v46 = vadd.f32 %v4166_v5, %v4165_v8  ;;  %v2148_v20 = vpop.f32.mrf.mxu0 }
 0x21e   : > { %v4168_v21 = vpop.f32.mrf.mxu1  ;;  %v2149_v52 = vadd.f32 %v2148_v20, %v5828_v58  ;;  %2879 = vmatprep.mubr.bf16.mxu0 %v2584_v48  ;;  %v2551_v10 = vmax.f32 %v2147_v61, 0.0  ;;  %v5943_v9 = vrot.slane %v6388_v0, %v691_v32  ;;  %v6389_v20 = vld [vmem:[#allocation23_spill] sm:$0xff] }
 0x21f   : > { %v2150_v56 = vpop.f32.mrf.mxu0  ;;  %2880 = vmatmul.mubr.bf16.gmra.mxu0 %v2583_v43 }
 0x220   : > { %v4169_v19 = vpop.f32.mrf.mxu1  ;;  %v2553_v35 = vmax.f32 %v2149_v52, 0.0  ;;  %v2151_v31 = vadd.f32 %v2150_v56, %v2018_v55  ;;  %v6390_v55 = vld [vmem:[#allocation24_spill] sm:$0xff] }
 0x221   : > { %v5931_v24 = vadd.f32 %v4169_v19, %v4168_v21  ;;  %v2154_v16 = vpop.f32.mrf.mxu0  ;;  %v2198_v21 = vadd.f32 %v6389_v20, %v5943_v9  ;;  %v4122_v61 = vadd.f32 %v5850_v38, %v6390_v55 }
 0x222   : > { %v4171_v44 = vpop.f32.mrf.mxu1  ;;  %v2586_v50 = vpack.c.bf16 %v2553_v35, %v2550_v51  ;;  %v2554_v54 = vmax.f32 %v2151_v31, 0.0  ;;  %v2155_v25 = vadd.f32 %v2154_v16, %v6384_v14  ;;  %v2206_v14 = vadd.f32 %v5854_v22, %v5943_v9 }
 0x223   : > { %v2156_v58 = vpop.f32.mrf.mxu0 }
 0x224   : > { %v4172_v15 = vpop.f32.mrf.mxu1  ;;  %v2587_v45 = vpack.c.bf16 %v2554_v54, %v2551_v10  ;;  %v2157_v40 = vadd.f32 %v2156_v58, %v6386_v17  ;;  %v2556_v7 = vmax.f32 %v2155_v25, 0.0  ;;  %v4128_v25 = vadd.f32 %v5860_v13, %v5856_v18 }
 0x225   : > { %v5937_v59 = vadd.f32 %v4172_v15, %v4171_v44  ;;  %v2158_v47 = vpop.f32.mrf.mxu0  ;;  %v2201_v44 = vadd.f32 %v4122_v61, %v5943_v9 }
 0x226   : > { %v4174_v39 = vpop.f32.mrf.mxu1  ;;  %v2159_v37 = vadd.f32 %v2158_v47, %v6387_v23  ;;  %2887 = vmatprep.mubr.bf16.mxu0 %v2587_v45  ;;  %v2557_v12 = vmax.f32 %v2157_v40, 0.0 }
 0x227   : > { %v2160_v62 = vpop.f32.mrf.mxu0  ;;  %2888 = vmatmul.mubr.bf16.gmra.mxu0 %v2586_v50 }
 0x228   : > { %v4175_v2 = vpop.f32.mrf.mxu1  ;;  %v2559_v1 = vmax.f32 %v2159_v37, 0.0  ;;  %v2161_v8 = vadd.f32 %v2160_v62, %v2028_v33  ;;  %v2209_v62 = vadd.f32 %v4128_v25, %v5943_v9 }
 0x229   : > { %v5945_v6 = vadd.f32 %v4175_v2, %v4174_v39  ;;  %v4193_v49 = vpop.f32.mrf.mxu0 }
 0x22a   : > { %v4269_v43 = vpop.f32.mrf.mxu1  ;;  %v2589_v41 = vpack.c.bf16 %v2559_v1, %v2556_v7  ;;  %v2560_v5 = vmax.f32 %v2161_v8, 0.0 }
 0x22b   : > { %v4194_v48 = vpop.f32.mrf.mxu0 }
 0x22c   : > { %v4270_v3 = vpop.f32.mrf.mxu1  ;;  %v2590_v52 = vpack.c.bf16 %v2560_v5, %v2557_v12  ;;  %v4195_v56 = vadd.f32 %v4194_v48, %v4193_v49 }
 0x22d   : > { %v4196_v19 = vpop.f32.mrf.mxu0  ;;  %v4271_v4 = vadd.f32 %v4270_v3, %v4269_v43 }
 0x22e   : > { %v4272_v51 = vpop.f32.mrf.mxu1  ;;  %v2311_v35 = vadd.f32 %v4195_v56, %v2198_v21  ;;  %2895 = vmatprep.mubr.bf16.mxu0 %v2590_v52 }
 0x22f   : > { %v4197_v31 = vpop.f32.mrf.mxu0  ;;  %2896 = vmatmul.mubr.bf16.gmra.mxu0 %v2589_v41  ;;  %v2214_v41 = vadd.f32 %v5866_v26, %v5943_v9 }
 0x230   : > { %v4273_v16 = vpop.f32.mrf.mxu1  ;;  %v4198_v10 = vadd.f32 %v4197_v31, %v4196_v19  ;;  %v2424_v32 = vadd.f32 %v4271_v4, %v2311_v35  ;;  %v2217_v19 = vadd.f32 %v5871_v36, %v5943_v9 }
 0x231   : > { %v4199_v50 = vpop.f32.mrf.mxu0  ;;  %v4274_v15 = vadd.f32 %v4273_v16, %v4272_v51 }
 0x232   : > { %v4275_v54 = vpop.f32.mrf.mxu1  ;;  %v2314_v58 = vadd.f32 %v4198_v10, %v2201_v44  ;;  %v2504_v17 = vmax.f32 %v2424_v32, 0.0  ;;  %v2222_v32 = vadd.f32 %v5876_v57, %v5943_v9 }
 0x233   : > { %v4200_v45 = vpop.f32.mrf.mxu0 }
 0x234   : > { %v4276_v38 = vpop.f32.mrf.mxu1  ;;  %v2427_v47 = vadd.f32 %v4274_v15, %v2314_v58  ;;  %v4201_v39 = vadd.f32 %v4200_v45, %v4199_v50 }
 0x235   : > { %v4202_v42 = vpop.f32.mrf.mxu0  ;;  %v4277_v2 = vadd.f32 %v4276_v38, %v4275_v54 }
 0x236   : > { %v4278_v33 = vpop.f32.mrf.mxu1  ;;  %v2507_v40 = vmax.f32 %v2427_v47, 0.0  ;;  %v2319_v23 = vadd.f32 %v4201_v39, %v2206_v14 }
 0x237   : > { %v4203_v37 = vpop.f32.mrf.mxu0 }
 0x238   : > { %v4279_v0 = vpop.f32.mrf.mxu1  ;;  %v4204_v7 = vadd.f32 %v4203_v37, %v4202_v42  ;;  %v2564_v1 = vpack.c.bf16 %v2507_v40, %v2504_v17  ;;  %v2432_v22 = vadd.f32 %v4277_v2, %v2319_v23  ;;  %v2225_v42 = vadd.f32 %v5881_v27, %v5943_v9 }
 0x239   : > { %v4205_v8 = vpop.f32.mrf.mxu0  ;;  %v4280_v12 = vadd.f32 %v4279_v0, %v4278_v33 }
 0x23a   : > { %v4281_v49 = vpop.f32.mrf.mxu1  ;;  %v2322_v43 = vadd.f32 %v4204_v7, %v2209_v62  ;;  %4457 = vmatprep.mubr.bf16.mxu1 %v2564_v1  ;;  %v2510_v21 = vmax.f32 %v2432_v22, 0.0  ;;  %v2230_v1 = vadd.f32 %v5886_v63, %v5943_v9 }
 0x23b   : > { %v4206_v18 = vpop.f32.mrf.mxu0 }
 0x23c   : > { %v4282_v13 = vpop.f32.mrf.mxu1  ;;  %v2435_v5 = vadd.f32 %v4280_v12, %v2322_v43  ;;  %v4207_v48 = vadd.f32 %v4206_v18, %v4205_v8 }
 0x23d   : > { %v4208_v3 = vpop.f32.mrf.mxu0  ;;  %v4283_v35 = vadd.f32 %v4282_v13, %v4281_v49 }
 0x23e   : > { %v4284_v20 = vpop.f32.mrf.mxu1  ;;  %v2513_v55 = vmax.f32 %v2435_v5, 0.0  ;;  %v2327_v61 = vadd.f32 %v4207_v48, %v2214_v41  ;;  %v2233_v5 = vadd.f32 %v5891_v60, %v5943_v9 }
 0x23f   : > { %v4209_v52 = vpop.f32.mrf.mxu0 }
 0x240   : > { %v4285_v56 = vpop.f32.mrf.mxu1  ;;  %v2567_v51 = vpack.c.bf16 %v2513_v55, %v2510_v21  ;;  %v4210_v31 = vadd.f32 %v4209_v52, %v4208_v3  ;;  %v2440_v4 = vadd.f32 %v4283_v35, %v2327_v61 }
 0x241   : > { %v4211_v16 = vpop.f32.mrf.mxu0  ;;  %v4286_v26 = vadd.f32 %v4285_v56, %v4284_v20 }
 0x242   : > { %v4287_v44 = vpop.f32.mrf.mxu1  ;;  %v2330_v10 = vadd.f32 %v4210_v31, %v2217_v19  ;;  %4458 = vmatmul.mubr.bf16.vlgmr.msra.gmra.mxu1 %v2567_v51  ;;  %v2516_v14 = vmax.f32 %v2440_v4, 0.0  ;;  %v2238_v51 = vadd.f32 %v5896_v53, %v5943_v9 }
 0x243   : > { %v4212_v50 = vpop.f32.mrf.mxu0 }
 0x244   : > { %v4288_v54 = vpop.f32.mrf.mxu1  ;;  %v2443_v58 = vadd.f32 %v4286_v26, %v2330_v10  ;;  %v4213_v15 = vadd.f32 %v4212_v50, %v4211_v16 }
 0x245   : > { %v4214_v45 = vpop.f32.mrf.mxu0  ;;  %v4289_v33 = vadd.f32 %v4288_v54, %v4287_v44  ;;  %v2241_v54 = vadd.f32 %v5901_v34, %v5943_v9 }
 0x246   : > { %v4290_v38 = vpop.f32.mrf.mxu1  ;;  %v2519_v36 = vmax.f32 %v2443_v58, 0.0  ;;  %v2335_v25 = vadd.f32 %v4213_v15, %v2222_v32 }
 0x247   : > { %v4215_v47 = vpop.f32.mrf.mxu0 }
 0x248   : > { %v4291_v39 = vpop.f32.mrf.mxu1  ;;  %v4216_v17 = vadd.f32 %v4215_v47, %v4214_v45  ;;  %v2570_v40 = vpack.c.bf16 %v2519_v36, %v2516_v14  ;;  %v2448_v0 = vadd.f32 %v4289_v33, %v2335_v25 }
 0x249   : > { %v4217_v23 = vpop.f32.mrf.mxu0  ;;  %v4292_v57 = vadd.f32 %v4291_v39, %v4290_v38  ;;  %v2246_v39 = vadd.f32 %v5906_v11, %v5943_v9 }
 0x24a   : > { %v4293_v37 = vpop.f32.mrf.mxu1  ;;  %v2338_v62 = vadd.f32 %v4216_v17, %v2225_v42  ;;  %4461 = vmatprep.mubr.bf16.mxu1 %v2570_v40  ;;  %v2522_v12 = vmax.f32 %v2448_v0, 0.0 }
 0x24b   : > { %v4218_v2 = vpop.f32.mrf.mxu0 }
 0x24c   : > { %v4294_v7 = vpop.f32.mrf.mxu1  ;;  %v2451_v8 = vadd.f32 %v4292_v57, %v2338_v62  ;;  %v4219_v49 = vadd.f32 %v4218_v2, %v4217_v23  ;;  %v2249_v57 = vadd.f32 %v5911_v29, %v5943_v9 }
 0x24d   : > { %v4220_v22 = vpop.f32.mrf.mxu0  ;;  %v4295_v3 = vadd.f32 %v4294_v7, %v4293_v37 }
 0x24e   : > { %v4296_v43 = vpop.f32.mrf.mxu1  ;;  %v2525_v27 = vmax.f32 %v2451_v8, 0.0  ;;  %v2343_v18 = vadd.f32 %v4219_v49, %v2230_v1 }
 0x24f   : > { %v4221_v13 = vpop.f32.mrf.mxu0 }
 0x250   : > { %v4297_v41 = vpop.f32.mrf.mxu1  ;;  %v2573_v48 = vpack.c.bf16 %v2525_v27, %v2522_v12  ;;  %v4222_v20 = vadd.f32 %v4221_v13, %v4220_v22  ;;  %v2456_v61 = vadd.f32 %v4295_v3, %v2343_v18  ;;  %v2254_v18 = vadd.f32 %v5916_v30, %v5943_v9 }
 0x251   : > { %v4223_v21 = vpop.f32.mrf.mxu0  ;;  %v4298_v63 = vadd.f32 %v4297_v41, %v4296_v43 }
 0x252   : > { %v4299_v55 = vpop.f32.mrf.mxu1  ;;  %v2346_v52 = vadd.f32 %v4222_v20, %v2233_v5  ;;  %4462 = vmatmul.mubr.bf16.gmra.mxu1 %v2573_v48  ;;  %v2528_v4 = vmax.f32 %v2456_v61, 0.0  ;;  %v2257_v61 = vadd.f32 %v5921_v28, %v5943_v9 }
 0x253   : > { %v4224_v56 = vpop.f32.mrf.mxu0 }
 0x254   : > { %v4300_v19 = vpop.f32.mrf.mxu1  ;;  %v2459_v35 = vadd.f32 %v4298_v63, %v2346_v52  ;;  %v4225_v31 = vadd.f32 %v4224_v56, %v4223_v21 }
 0x255   : > { %v4226_v16 = vpop.f32.mrf.mxu0  ;;  %v4301_v32 = vadd.f32 %v4300_v19, %v4299_v55 }
 0x256   : > { %v4302_v44 = vpop.f32.mrf.mxu1  ;;  %v2531_v60 = vmax.f32 %v2459_v35, 0.0  ;;  %v2351_v10 = vadd.f32 %v4225_v31, %v2238_v51 }
 0x257   : > { %v4227_v26 = vpop.f32.mrf.mxu0 }
 0x258   : > { %v4303_v50 = vpop.f32.mrf.mxu1  ;;  %v4228_v58 = vadd.f32 %v4227_v26, %v4226_v16  ;;  %v2576_v15 = vpack.c.bf16 %v2531_v60, %v2528_v4  ;;  %v2464_v14 = vadd.f32 %v4301_v32, %v2351_v10  ;;  %v2262_v4 = vadd.f32 %v5926_v46, %v5943_v9 }
 0x259   : > { %v4229_v45 = vpop.f32.mrf.mxu0  ;;  %v4304_v53 = vadd.f32 %v4303_v50, %v4302_v44 }
 0x25a   : > { %v4305_v38 = vpop.f32.mrf.mxu1  ;;  %v2354_v36 = vadd.f32 %v4228_v58, %v2241_v54  ;;  %4465 = vmatprep.mubr.bf16.mxu1 %v2576_v15  ;;  %v2534_v23 = vmax.f32 %v2464_v14, 0.0  ;;  %v4912_v58 = vld [vmem:[#allocation10 + $0x38] sm:$0xff]  }
 0x25b   : > { %v4230_v25 = vpop.f32.mrf.mxu0  ;;  %4477 = vmatprep.subr.bf16.mxu1 %v4912_v58 }
 0x25c   : > { %v4306_v47 = vpop.f32.mrf.mxu1  ;;  %v2467_v42 = vadd.f32 %v4304_v53, %v2354_v36  ;;  %v4231_v33 = vadd.f32 %v4230_v25, %v4229_v45  ;;  %4478 = vmatpush3.bf16.msra.mxu1 %v4912_v58 }
 0x25d   : > { %v4232_v17 = vpop.f32.mrf.mxu0  ;;  %v4307_v7 = vadd.f32 %v4306_v47, %v4305_v38  ;;  %v2265_v38 = vadd.f32 %v5931_v24, %v5943_v9 }
 0x25e   : > { %v4308_v40 = vpop.f32.mrf.mxu1  ;;  %v2537_v34 = vmax.f32 %v2467_v42, 0.0  ;;  %v2359_v37 = vadd.f32 %v4231_v33, %v2246_v39  ;;  %v4913_v33 = vld [vmem:[#allocation10 + $0x30] sm:$0xff]  }
 0x25f   : > { %v4233_v0 = vpop.f32.mrf.mxu0  ;;  %4479 = vmatprep.subr.bf16.mxu1 %v4913_v33 }
 0x260   : > { %v4309_v62 = vpop.f32.mrf.mxu1  ;;  %v2579_v2 = vpack.c.bf16 %v2537_v34, %v2534_v23  ;;  %v4234_v1 = vadd.f32 %v4233_v0, %v4232_v17  ;;  %v2472_v22 = vadd.f32 %v4307_v7, %v2359_v37  ;;  %v2270_v23 = vadd.f32 %v5937_v59, %v5943_v9  ;;  %4480 = vmatpush3.bf16.msra.mxu1 %v4913_v33  ;;  %v4914_v7 = vld [vmem:[#allocation10 + $0x28] sm:$0xff]  }
 0x261   : > { %v4235_v8 = vpop.f32.mrf.mxu0  ;;  %v4310_v11 = vadd.f32 %v4309_v62, %v4308_v40  ;;  %4481 = vmatprep.subr.bf16.mxu1 %v4914_v7 }
 0x262   : > { %v4311_v49 = vpop.f32.mrf.mxu1  ;;  %v2362_v43 = vadd.f32 %v4234_v1, %v2249_v57  ;;  %4466 = vmatmul.mubr.bf16.gmra.mxu1 %v2579_v2  ;;  %v2540_v3 = vmax.f32 %v2472_v22, 0.0  ;;  %v4915_v1 = vld [vmem:[#allocation10 + $0x20] sm:$0xff]   ;;  %v2273_v22 = vadd.f32 %v5945_v6, %v5943_v9  ;;  %v4917_v9 = vld [vmem:[#allocation10 + $0x10] sm:$0xff]   ;;  %v4918_v6 = vld [vmem:[#allocation10 + $0x8] sm:$0xff]  }
 0x263   : > { %v4236_v12 = vpop.f32.mrf.mxu0 }
 0x264   : > { %v4312_v27 = vpop.f32.mrf.mxu1  ;;  %v2475_v13 = vadd.f32 %v4310_v11, %v2362_v43  ;;  %v4237_v41 = vadd.f32 %v4236_v12, %v4235_v8  ;;  %4482 = vmatpush3.bf16.msra.mxu1 %v4914_v7 }
 0x265   : > { %v4238_v5 = vpop.f32.mrf.mxu0  ;;  %v4313_v52 = vadd.f32 %v4312_v27, %v4311_v49  ;;  %4483 = vmatprep.subr.bf16.mxu1 %v4915_v1 }
 0x266   : > { %v4314_v48 = vpop.f32.mrf.mxu1  ;;  %v2543_v29 = vmax.f32 %v2475_v13, 0.0  ;;  %v2367_v20 = vadd.f32 %v4237_v41, %v2254_v18  ;;  %v4916_v13 = vld [vmem:[#allocation10 + $0x18] sm:$0xff]  }
 0x267   : > { %v4239_v21 = vpop.f32.mrf.mxu0 }
 0x268   : > { %v4315_v55 = vpop.f32.mrf.mxu1  ;;  %v4240_v63 = vadd.f32 %v4239_v21, %v4238_v5  ;;  %v2582_v56 = vpack.c.bf16 %v2543_v29, %v2540_v3  ;;  %v2480_v35 = vadd.f32 %v4313_v52, %v2367_v20  ;;  %4484 = vmatpush3.bf16.msra.mxu1 %v4915_v1  ;;  %v4919_v29 = vld [vmem:[#allocation10] sm:$0xff]  }
 0x269   : > { %v4241_v19 = vpop.f32.mrf.mxu0  ;;  %v4316_v30 = vadd.f32 %v4315_v55, %v4314_v48  ;;  %4485 = vmatprep.subr.bf16.mxu1 %v4916_v13 }
 0x26a   : > { %v4317_v51 = vpop.f32.mrf.mxu1  ;;  %v2370_v31 = vadd.f32 %v4240_v63, %v2257_v61  ;;  %4469 = vmatprep.mubr.bf16.mxu1 %v2582_v56  ;;  %v2546_v54 = vmax.f32 %v2480_v35, 0.0 }
 0x26b   : > { %v4242_v16 = vpop.f32.mrf.mxu0 }
 0x26c   : > { %v4318_v44 = vpop.f32.mrf.mxu1  ;;  %v2483_v60 = vadd.f32 %v4316_v30, %v2370_v31  ;;  %v4243_v10 = vadd.f32 %v4242_v16, %v4241_v19  ;;  %4486 = vmatpush3.bf16.msra.mxu1 %v4916_v13 }
 0x26d   : > { %v4244_v26 = vpop.f32.mrf.mxu0  ;;  %v4319_v36 = vadd.f32 %v4318_v44, %v4317_v51  ;;  %4487 = vmatprep.subr.bf16.mxu1 %v4917_v9 }
 0x26e   : > { %v4320_v50 = vpop.f32.mrf.mxu1  ;;  %v2549_v28 = vmax.f32 %v2483_v60, 0.0  ;;  %v2375_v32 = vadd.f32 %v4243_v10, %v2262_v4 }
 0x26f   : > { %v4245_v15 = vpop.f32.mrf.mxu0 }
 0x270   : > { %v4321_v45 = vpop.f32.mrf.mxu1  ;;  %v2585_v14 = vpack.c.bf16 %v2549_v28, %v2546_v54  ;;  %v4246_v53 = vadd.f32 %v4245_v15, %v4244_v26  ;;  %v2488_v46 = vadd.f32 %v4319_v36, %v2375_v32  ;;  %4488 = vmatpush3.bf16.msra.mxu1 %v4917_v9 }
 0x271   : > { %v4247_v25 = vpop.f32.mrf.mxu0  ;;  %v4322_v42 = vadd.f32 %v4321_v45, %v4320_v50  ;;  %4489 = vmatprep.subr.bf16.mxu1 %v4918_v6 }
 0x272   : > { %v4323_v47 = vpop.f32.mrf.mxu1  ;;  %v2378_v39 = vadd.f32 %v4246_v53, %v2265_v38  ;;  %4470 = vmatmul.mubr.bf16.gmra.mxu1 %v2585_v14  ;;  %v2552_v62 = vmax.f32 %v2488_v46, 0.0  ;;  %v6004_v53 = vld [vmem:[%s6349_s4] ss:$0 sm:$0xff] }
 0x273   : > { %v4248_v17 = vpop.f32.mrf.mxu0 }
 0x274   : > { %v4324_v40 = vpop.f32.mrf.mxu1  ;;  %v2491_v34 = vadd.f32 %v4322_v42, %v2378_v39  ;;  %v4249_v37 = vadd.f32 %v4248_v17, %v4247_v25  ;;  %4490 = vmatpush3.bf16.msra.mxu1 %v4918_v6 }
 0x275   : > { %v4250_v24 = vpop.f32.mrf.mxu0  ;;  %v4325_v43 = vadd.f32 %v4324_v40, %v4323_v47  ;;  %4491 = vmatprep.subr.bf16.mxu1 %v4919_v29 }
 0x276   : > { %v4326_v0 = vpop.f32.mrf.mxu1  ;;  %v2555_v57 = vmax.f32 %v2491_v34, 0.0  ;;  %v2383_v2 = vadd.f32 %v4249_v37, %v2270_v23 }
 0x277   : > { %v4251_v8 = vpop.f32.mrf.mxu0 }
 0x278   : > { %v4327_v49 = vpop.f32.mrf.mxu1  ;;  %v4252_v11 = vadd.f32 %v4251_v8, %v4250_v24  ;;  %v2588_v12 = vpack.c.bf16 %v2555_v57, %v2552_v62  ;;  %v2496_v59 = vadd.f32 %v4325_v43, %v2383_v2  ;;  %4492 = vmatpush3.bf16.msra.mxu1 %v4919_v29 }
 0x279   : > { %v4328_v18 = vadd.f32 %v4327_v49, %v4326_v0 }
 0x27a   : > { %v2386_v27 = vadd.f32 %v4252_v11, %v2273_v22  ;;  %4473 = vmatprep.mubr.bf16.mxu1 %v2588_v12  ;;  %v2558_v5 = vmax.f32 %v2496_v59, 0.0 }
 0x27c   : > { %v2499_v41 = vadd.f32 %v4328_v18, %v2386_v27 }
 0x27e   : > { %v2561_v48 = vmax.f32 %v2499_v41, 0.0 }
 0x280   : > { %v2591_v3 = vpack.c.bf16 %v2561_v48, %v2558_v5 }
 0x282   : > { %4474 = vmatmul.mubr.bf16.gmra.mxu1 %v2591_v3 }
 0x2a7   : > { %v4345_v20 = vpop.f32.mrf.mxu0 }
 0x2a9   : > { %v4346_v21 = vpop.f32.mrf.mxu0 }
 0x2aa   : > { %v4347_v45 = vadd.f32 %v4346_v21, %v4345_v20 }
 0x2ab   : > { %v4348_v55 = vpop.f32.mrf.mxu0 }
 0x2ac   : > { %v2826_v39 = vadd.f32 %v4347_v45, %v6004_v53 }
 0x2ad   : > { %v4349_v61 = vpop.f32.mrf.mxu0 }
 0x2ae   : > { %v4350_v47 = vadd.f32 %v4349_v61, %v4348_v55 }
 0x2af   : > { %v4351_v52 = vpop.f32.mrf.mxu0 }
 0x2b0   : > { %v2829_v37 = vadd.f32 %v4350_v47, %v6004_v53 }
 0x2b1   : > { %v4352_v63 = vpop.f32.mrf.mxu0 }
 0x2b2   : > { %v4353_v14 = vadd.f32 %v4352_v63, %v4351_v52 }
 0x2b3   : > { %v4354_v56 = vpop.f32.mrf.mxu0 }
 0x2b4   : > { %v2834_v17 = vadd.f32 %v4353_v14, %v6004_v53 }
 0x2b5   : > { %v4355_v19 = vpop.f32.mrf.mxu0 }
 0x2b6   : > { %v4356_v38 = vadd.f32 %v4355_v19, %v4354_v56 }
 0x2b7   : > { %v4357_v51 = vpop.f32.mrf.mxu0 }
 0x2b8   : > { %v2837_v42 = vadd.f32 %v4356_v38, %v6004_v53 }
 0x2b9   : > { %v4358_v35 = vpop.f32.mrf.mxu0 }
 0x2ba   : > { %v4359_v11 = vadd.f32 %v4358_v35, %v4357_v51 }
 0x2bb   : > { %v4360_v31 = vpop.f32.mrf.mxu0 }
 0x2bc   : > { %v2842_v5 = vadd.f32 %v4359_v11, %v6004_v53 }
 0x2bd   : > { %v4361_v30 = vpop.f32.mrf.mxu0 }
 0x2be   : > { %v4362_v13 = vadd.f32 %v4361_v30, %v4360_v31 }
 0x2bf   : > { %v4363_v16 = vpop.f32.mrf.mxu0 }
 0x2c0   : > { %v2845_v21 = vadd.f32 %v4362_v13, %v6004_v53 }
 0x2c1   : > { %v4364_v44 = vpop.f32.mrf.mxu0 }
 0x2c2   : > { %v4365_v59 = vadd.f32 %v4364_v44, %v4363_v16 }
 0x2c3   : > { %v4366_v4 = vpop.f32.mrf.mxu0 }
 0x2c4   : > { %v2850_v9 = vadd.f32 %v4365_v59, %v6004_v53 }
 0x2c5   : > { %v4367_v60 = vpop.f32.mrf.mxu0 }
 0x2c6   : > { %v4368_v12 = vadd.f32 %v4367_v60, %v4366_v4 }
 0x2c7   : > { %v5989_v10 = vpop.f32.mrf.mxu0 }
 0x2c8   : > { %v2853_v48 = vadd.f32 %v4368_v12, %v6004_v53 }
 0x2c9   : > { %v5991_v26 = vpop.f32.mrf.mxu0 }
 0x2ca   : > { %v4371_v44 = vadd.f32 %v5991_v26, %v5989_v10 }
 0x2cb   : > { %v5993_v50 = vpop.f32.mrf.mxu0 }
 0x2cc   : > { %v2858_v47 = vadd.f32 %v4371_v44, %v6004_v53 }
 0x2cd   : > { %v5995_v54 = vpop.f32.mrf.mxu0 }
 0x2ce   : > { %v4374_v14 = vadd.f32 %v5995_v54, %v5993_v50 }
 0x2cf   : > { %v5997_v28 = vpop.f32.mrf.mxu0 }
 0x2d0   : > { %v2861_v10 = vadd.f32 %v4374_v14, %v6004_v53 }
 0x2d1   : > { %v4376_v32 = vpop.f32.mrf.mxu0 }
 0x2d2   : > { %v4377_v60 = vadd.f32 %v4376_v32, %v5997_v28 }
 0x2d3   : > { %v4378_v58 = vpop.f32.mrf.mxu0 }
 0x2d5   : > { %v4379_v15 = vpop.f32.mrf.mxu0 }
 0x2d6   : > { %v4380_v4 = vadd.f32 %v4379_v15, %v4378_v58 }
 0x2d7   : > { %v5999_v36 = vpop.f32.mrf.mxu0 }
 0x2d9   : > { %v6008_v33 = vpop.f32.mrf.mxu0 }
 0x2db   : > { %v6012_v57 = vpop.f32.mrf.mxu0 }
 0x2dd   : > { %v6014_v22 = vpop.f32.mrf.mxu0 }
 0x2df   : > { %v4387_v27 = vpop.f32.mrf.mxu0 }
 0x2e1   : > { %v4388_v3 = vpop.f32.mrf.mxu0 }
 0x2e3   : > { %v4390_v63 = vpop.f32.mrf.mxu0 }
 0x2e5   : > { %v4391_v30 = vpop.f32.mrf.mxu0 }
 0x2e7   : > { %v4393_v45 = vpop.f32.mrf.mxu0 }
 0x302   : > { %v4459_v25 = vpop.f32.mrf.mxu1 }
 0x303   : > { %v2947_v24 = vadd.f32 %v4459_v25, %v2834_v17 }
 0x304   : > { %v2938_v46 = vpop.f32.mrf.mxu1 }
 0x305   : > { %v2939_v23 = vadd.f32 %v2938_v46, %v2826_v39  ;;  %v3019_v8 = vmax.f32 %v2947_v24, 0.0  ;;  %v2869_v46 = vadd.f32 %v4380_v4, %v6004_v53  ;;  %v4394_v39 = vpop.f32.mrf.mxu0 }
 0x306   : > { %v4460_v40 = vpop.f32.mrf.mxu1 }
 0x307   : > { %v2950_v34 = vadd.f32 %v4460_v40, %v2837_v42  ;;  %v3017_v7 = vmax.f32 %v2939_v23, 0.0  ;;  %v2866_v42 = vadd.f32 %v4377_v60, %v6004_v53  ;;  %v4396_v58 = vpop.f32.mrf.mxu0 }
 0x308   : > { %v2941_v0 = vpop.f32.mrf.mxu1 }
 0x309   : > { %v2942_v62 = vadd.f32 %v2941_v0, %v2829_v37  ;;  %v3020_v2 = vmax.f32 %v2950_v34, 0.0  ;;  %v4397_v24 = vpop.f32.mrf.mxu0 }
 0x30b   : > { %v3018_v1 = vmax.f32 %v2942_v62, 0.0  ;;  %v3038_v43 = vpack.c.bf16 %v3020_v2, %v3019_v8  ;;  %v4383_v62 = vadd.f32 %v6008_v33, %v5999_v36  ;;  %v4392_v2 = vadd.f32 %v4391_v30, %v4390_v63 }
 0x30d   : > { %v3037_v49 = vpack.c.bf16 %v3018_v1, %v3017_v7  ;;  %v4389_v7 = vadd.f32 %v4388_v3, %v4387_v27  ;;  %v4399_v1 = vpop.f32.mrf.mxu0  ;;  %v2874_v11 = vadd.f32 %v4383_v62, %v6004_v53  ;;  %v2885_v12 = vadd.f32 %v4392_v2, %v6004_v53 }
 0x30f   : > { %4493 = vmatprep.mubr.bf16.mxu1 %v3037_v49  ;;  %v4386_v49 = vadd.f32 %v6014_v22, %v6012_v57  ;;  %v4400_v59 = vpop.f32.mrf.mxu0 }
 0x310   : > { %4494 = vmatmul.mubr.bf16.vlgmr.msra.gmra.mxu1 %v3038_v43 }
 0x311   : > { %v2877_v36 = vadd.f32 %v4386_v49, %v6004_v53  ;;  %v4402_v3 = vpop.f32.mrf.mxu0 }
 0x312   : > { %v4463_v18 = vpop.f32.mrf.mxu1 }
 0x313   : > { %v2963_v55 = vadd.f32 %v4463_v18, %v2850_v9  ;;  %v2882_v18 = vadd.f32 %v4389_v7, %v6004_v53 }
 0x314   : > { %v2954_v41 = vpop.f32.mrf.mxu1 }
 0x315   : > { %v2955_v29 = vadd.f32 %v2954_v41, %v2842_v5  ;;  %v3023_v35 = vmax.f32 %v2963_v55, 0.0  ;;  %v4395_v55 = vadd.f32 %v4394_v39, %v4393_v45 }
 0x316   : > { %v4464_v6 = vpop.f32.mrf.mxu1 }
 0x317   : > { %v2966_v20 = vadd.f32 %v4464_v6, %v2853_v48  ;;  %v3021_v19 = vmax.f32 %v2955_v29, 0.0 }
 0x318   : > { %v2957_v61 = vpop.f32.mrf.mxu1 }
 0x319   : > { %v2958_v52 = vadd.f32 %v2957_v61, %v2845_v21  ;;  %v3024_v56 = vmax.f32 %v2966_v20, 0.0  ;;  %v4403_v20 = vpop.f32.mrf.mxu0 }
 0x31a   : > { %v4404_v61 = vadd.f32 %v4403_v20, %v4402_v3 }
 0x31b   : > { %v3022_v51 = vmax.f32 %v2958_v52, 0.0  ;;  %v3040_v16 = vpack.c.bf16 %v3024_v56, %v3023_v35  ;;  %v4401_v52 = vadd.f32 %v4400_v59, %v4399_v1  ;;  %v4398_v56 = vadd.f32 %v4397_v24, %v4396_v58 }
 0x31c   : > { %v2901_v35 = vadd.f32 %v4404_v61, %v6004_v53 }
 0x31d   : > { %v3039_v31 = vpack.c.bf16 %v3022_v51, %v3021_v19  ;;  %v2890_v51 = vadd.f32 %v4395_v55, %v6004_v53  ;;  %v2893_v4 = vadd.f32 %v4398_v56, %v6004_v53 }
 0x31f   : > { %4497 = vmatprep.mubr.bf16.mxu1 %v3039_v31  ;;  %v2898_v31 = vadd.f32 %v4401_v52, %v6004_v53 }
 0x320   : > { %4498 = vmatmul.mubr.bf16.gmra.mxu1 %v3040_v16 }
 0x322   : > { %v4467_v38 = vpop.f32.mrf.mxu1 }
 0x323   : > { %v2979_v26 = vadd.f32 %v4467_v38, %v2866_v42 }
 0x324   : > { %v2970_v25 = vpop.f32.mrf.mxu1 }
 0x325   : > { %v2971_v40 = vadd.f32 %v2970_v25, %v2858_v47  ;;  %v3027_v54 = vmax.f32 %v2979_v26, 0.0 }
 0x326   : > { %v4468_v17 = vpop.f32.mrf.mxu1 }
 0x327   : > { %v2982_v23 = vadd.f32 %v4468_v17, %v2869_v46  ;;  %v3025_v34 = vmax.f32 %v2971_v40, 0.0  ;;  %v3983_v17 = vld [vmem:[%s6351_s6] ss:$0 sm:$0xff] }
 0x328   : > { %v2973_v28 = vpop.f32.mrf.mxu1 }
 0x329   : > { %v2974_v32 = vadd.f32 %v2973_v28, %v2861_v10  ;;  %v3028_v15 = vmax.f32 %v2982_v23, 0.0 }
 0x32b   : > { %v3026_v50 = vmax.f32 %v2974_v32, 0.0  ;;  %v3042_v0 = vpack.c.bf16 %v3028_v15, %v3027_v54 }
 0x32d   : > { %v3041_v37 = vpack.c.bf16 %v3026_v50, %v3025_v34 }
 0x32f   : > { %4501 = vmatprep.mubr.bf16.mxu1 %v3041_v37 }
 0x330   : > { %4502 = vmatmul.mubr.bf16.gmra.mxu1 %v3042_v0 }
 0x332   : > { %v4471_v8 = vpop.f32.mrf.mxu1 }
 0x333   : > { %v2995_v33 = vadd.f32 %v4471_v8, %v2882_v18 }
 0x334   : > { %v2986_v43 = vpop.f32.mrf.mxu1 }
 0x335   : > { %v2987_v41 = vadd.f32 %v2986_v43, %v2874_v11  ;;  %v3031_v22 = vmax.f32 %v2995_v33, 0.0 }
 0x336   : > { %v4472_v13 = vpop.f32.mrf.mxu1 }
 0x337   : > { %v2998_v5 = vadd.f32 %v4472_v13, %v2885_v12  ;;  %v3029_v6 = vmax.f32 %v2987_v41, 0.0 }
 0x338   : > { %v2989_v27 = vpop.f32.mrf.mxu1 }
 0x339   : > { %v2990_v48 = vadd.f32 %v2989_v27, %v2877_v36  ;;  %v3032_v9 = vmax.f32 %v2998_v5, 0.0 }
 0x33b   : > { %v3030_v57 = vmax.f32 %v2990_v48, 0.0  ;;  %v3044_v21 = vpack.c.bf16 %v3032_v9, %v3031_v22 }
 0x33d   : > { %v3043_v29 = vpack.c.bf16 %v3030_v57, %v3029_v6 }
 0x33f   : > { %4505 = vmatprep.mubr.bf16.mxu1 %v3043_v29 }
 0x340   : > { %4506 = vmatmul.mubr.bf16.gmra.mxu1 %v3044_v21 }
 0x342   : > { %v4475_v63 = vpop.f32.mrf.mxu1 }
 0x343   : > { %v3011_v60 = vadd.f32 %v4475_v63, %v2898_v31 }
 0x344   : > { %v3002_v19 = vpop.f32.mrf.mxu1 }
 0x345   : > { %v3003_v16 = vadd.f32 %v3002_v19, %v2890_v51  ;;  %v3035_v46 = vmax.f32 %v3011_v60, 0.0 }
 0x346   : > { %v4476_v30 = vpop.f32.mrf.mxu1 }
 0x347   : > { %v3014_v44 = vadd.f32 %v4476_v30, %v2901_v35  ;;  %v3033_v25 = vmax.f32 %v3003_v16, 0.0 }
 0x348   : > { %v3005_v38 = vpop.f32.mrf.mxu1 }
 0x349   : > { %v3006_v14 = vadd.f32 %v3005_v38, %v2893_v4  ;;  %v3036_v45 = vmax.f32 %v3014_v44, 0.0 }
 0x34b   : > { %v3034_v47 = vmax.f32 %v3006_v14, 0.0  ;;  %v3046_v42 = vpack.c.bf16 %v3036_v45, %v3035_v46 }
 0x34d   : > { %v3045_v39 = vpack.c.bf16 %v3034_v47, %v3033_v25 }
 0x34f   : > { %4509 = vmatprep.mubr.bf16.mxu1 %v3045_v39 }
 0x350   : > { %4510 = vmatmul.mubr.bf16.gmra.mxu1 %v3046_v42 }
 0x3d0   : > { %v4495_v40 = vpop.f32.mrf.mxu1 }
 0x3d1   : > { %v3161_v23 = vadd.f32 %v4495_v40, %v3983_v17 }
 0x3d2   : > { %v3152_v10 = vpop.f32.mrf.mxu1 }
 0x3d3   : > { %v6044_v26 = vadd.f32 %v3983_v17, %v3152_v10  ;;  %3235 = vadd.xlane.f32.xlu1 %v3161_v23 }
 0x3d4   : > { %v4496_v53 = vpop.f32.mrf.mxu1 }
 0x3d5   : > { %v6046_v28 = vadd.f32 %v4496_v53, %v3983_v17  ;;  %3231 = vadd.xlane.f32.xlu0 %v6044_v26 }
 0x3d6   : > { %v3155_v32 = vpop.f32.mrf.mxu1 }
 0x3d7   : > { %v6049_v58 = vadd.f32 %v3983_v17, %v3155_v32  ;;  %3237 = vadd.xlane.f32.xlu1 %v6046_v28 }
 0x3d9   : > { %3233 = vadd.xlane.f32.xlu0 %v6049_v58 }
 0x3e0   : > { %v4499_v15 = vpop.f32.mrf.mxu1 }
 0x3e1   : > { %v6053_v34 = vadd.f32 %v4499_v15, %v3983_v17 }
 0x3e2   : > { %v3168_v50 = vpop.f32.mrf.mxu1 }
 0x3e3   : > { %3243 = vadd.xlane.f32.xlu0 %v6053_v34  ;;  %v6056_v37 = vadd.f32 %v3983_v17, %v3168_v50 }
 0x3e4   : > { %v4500_v54 = vpop.f32.mrf.mxu1 }
 0x3e5   : > { %v6058_v24 = vadd.f32 %v4500_v54, %v3983_v17 }
 0x3e6   : > { %v3171_v0 = vpop.f32.mrf.mxu1 }
 0x3e7   : > { %3245 = vadd.xlane.f32.xlu1 %v6058_v24  ;;  %3239 = vadd.xlane.f32.xlu0 %v6056_v37  ;;  %v6062_v62 = vadd.f32 %v3983_v17, %v3171_v0 }
 0x3eb   : > { %3241 = vadd.xlane.f32.xlu1 %v6062_v62 }
 0x3f0   : > { %v4503_v2 = vpop.f32.mrf.mxu1 }
 0x3f1   : > { %v6065_v7 = vadd.f32 %v4503_v2, %v3983_v17 }
 0x3f2   : > { %v3184_v1 = vpop.f32.mrf.mxu1 }
 0x3f3   : > { %3251 = vadd.xlane.f32.xlu0 %v6065_v7  ;;  %v6068_v49 = vadd.f32 %v3983_v17, %v3184_v1 }
 0x3f4   : > { %v4504_v8 = vpop.f32.mrf.mxu1 }
 0x3f5   : > { %v6070_v43 = vadd.f32 %v4504_v8, %v3983_v17 }
 0x3f6   : > { %v3187_v11 = vpop.f32.mrf.mxu1 }
 0x3f7   : > { %3253 = vadd.xlane.f32.xlu1 %v6070_v43  ;;  %3247 = vadd.xlane.f32.xlu0 %v6068_v49  ;;  %v6074_v12 = vadd.f32 %v3983_v17, %v3187_v11 }
 0x3fb   : > { %3249 = vadd.xlane.f32.xlu1 %v6074_v12 }
 0x400   : > { %v4507_v59 = vpop.f32.mrf.mxu1 }
 0x401   : > { %v6077_v18 = vadd.f32 %v4507_v59, %v3983_v17 }
 0x402   : > { %v3200_v13 = vpop.f32.mrf.mxu1 }
 0x403   : > { %3259 = vadd.xlane.f32.xlu0 %v6077_v18  ;;  %v6080_v5 = vadd.f32 %v3983_v17, %v3200_v13 }
 0x404   : > { %v4508_v41 = vpop.f32.mrf.mxu1 }
 0x405   : > { %v6082_v36 = vadd.f32 %v4508_v41, %v3983_v17 }
 0x406   : > { %v3203_v33 = vpop.f32.mrf.mxu1 }
 0x407   : > { %3261 = vadd.xlane.f32.xlu1 %v6082_v36  ;;  %3255 = vadd.xlane.f32.xlu0 %v6080_v5  ;;  %v6086_v27 = vadd.f32 %v3983_v17, %v3203_v33 }
 0x40b   : > { %3257 = vadd.xlane.f32.xlu1 %v6086_v27 }
 0x410   : > { %v4511_v48 = vpop.f32.mrf.mxu1 }
 0x411   : > { %v6092_v22 = vadd.f32 %v4511_v48, %v3983_v17 }
 0x412   : > { %v3216_v3 = vpop.f32.mrf.mxu1 }
 0x413   : > { %v6089_v9 = vadd.f32 %v3983_v17, %v3216_v3 }
 0x414   : > { %v4512_v6 = vpop.f32.mrf.mxu1 }
 0x415   : > { %3263 = vadd.xlane.f32.xlu0 %v6089_v9  ;;  %v6098_v20 = vadd.f32 %v4512_v6, %v3983_v17 }
 0x416   : > { %v3219_v57 = vpop.f32.mrf.mxu1 }
 0x417   : > { %v6094_v29 = vadd.f32 %v3983_v17, %v3219_v57 }
 0x419   : > { %3265 = vadd.xlane.f32.xlu1 %v6094_v29  ;;  %3267 = vadd.xlane.f32.xlu0 %v6092_v22 }
 0x41d   : > { %3269 = vadd.xlane.f32.xlu1 %v6098_v20 }
 0x45c   : > { %v3236_v21 = vpop.xlane.xlu1 %3235 }
 0x45d   : > { %v3274_v55 = vmul.f32 0.0078125, %v3236_v21 }
 0x45e   : > { %v3232_v61 = vpop.xlane.xlu0 %3231 }
 0x45f   : > { %v6101_v52 = vsub.f32 %v3161_v23, %v3274_v55  ;;  %v3272_v63 = vmul.f32 0.0078125, %v3232_v61 }
 0x460   : > { %v3238_v56 = vpop.xlane.xlu1 %3237 }
 0x461   : > { %v6104_v19 = vsub.f32 %v6044_v26, %v3272_v63  ;;  %v3275_v51 = vmul.f32 0.0078125, %v3238_v56  ;;  %v3314_v35 = vmul.f32 %v6101_v52, %v6101_v52 }
 0x462   : > { %v3234_v31 = vpop.xlane.xlu0 %3233 }
 0x463   : > { %v6109_v30 = vsub.f32 %v6046_v28, %v3275_v51  ;;  %v3273_v16 = vmul.f32 0.0078125, %v3234_v31  ;;  %3336 = vadd.xlane.f32.xlu0 %v3314_v35  ;;  %v3312_v60 = vmul.f32 %v6104_v19, %v6104_v19 }
 0x465   : > { %v6112_v44 = vsub.f32 %v6049_v58, %v3273_v16  ;;  %v3315_v4 = vmul.f32 %v6109_v30, %v6109_v30 }
 0x467   : > { %3338 = vadd.xlane.f32.xlu1 %v3315_v4  ;;  %3332 = vadd.xlane.f32.xlu0 %v3312_v60  ;;  %v3313_v38 = vmul.f32 %v6112_v44, %v6112_v44 }
 0x46b   : > { %3334 = vadd.xlane.f32.xlu1 %v3313_v38 }
 0x46c   : > { %v3244_v14 = vpop.xlane.xlu0 %3243 }
 0x46d   : > { %v3278_v45 = vmul.f32 0.0078125, %v3244_v14 }
 0x46f   : > { %v6121_v25 = vsub.f32 %v6053_v34, %v3278_v45 }
 0x470   : > { %v3246_v47 = vpop.xlane.xlu1 %3245  ;;  %v3240_v46 = vpop.xlane.xlu0 %3239 }
 0x471   : > { %v3279_v39 = vmul.f32 0.0078125, %v3246_v47  ;;  %v3276_v42 = vmul.f32 0.0078125, %v3240_v46  ;;  %v3318_v17 = vmul.f32 %v6121_v25, %v6121_v25 }
 0x473   : > { %v6126_v40 = vsub.f32 %v6058_v24, %v3279_v39  ;;  %v6129_v23 = vsub.f32 %v6056_v37, %v3276_v42  ;;  %3344 = vadd.xlane.f32.xlu0 %v3318_v17 }
 0x474   : > { %v3242_v10 = vpop.xlane.xlu1 %3241 }
 0x475   : > { %v3277_v26 = vmul.f32 0.0078125, %v3242_v10  ;;  %v3319_v53 = vmul.f32 %v6126_v40, %v6126_v40  ;;  %v3316_v28 = vmul.f32 %v6129_v23, %v6129_v23 }
 0x477   : > { %v6136_v32 = vsub.f32 %v6062_v62, %v3277_v26  ;;  %3346 = vadd.xlane.f32.xlu1 %v3319_v53  ;;  %3340 = vadd.xlane.f32.xlu0 %v3316_v28 }
 0x479   : > { %v3317_v58 = vmul.f32 %v6136_v32, %v6136_v32 }
 0x47b   : > { %3342 = vadd.xlane.f32.xlu1 %v3317_v58 }
 0x47c   : > { %v3252_v15 = vpop.xlane.xlu0 %3251 }
 0x47d   : > { %v3282_v34 = vmul.f32 0.0078125, %v3252_v15 }
 0x47f   : > { %v6141_v50 = vsub.f32 %v6065_v7, %v3282_v34 }
 0x480   : > { %v3254_v54 = vpop.xlane.xlu1 %3253  ;;  %v3248_v37 = vpop.xlane.xlu0 %3247 }
 0x481   : > { %v3283_v24 = vmul.f32 0.0078125, %v3254_v54  ;;  %v3280_v0 = vmul.f32 0.0078125, %v3248_v37  ;;  %v3322_v2 = vmul.f32 %v6141_v50, %v6141_v50 }
 0x483   : > { %v6146_v62 = vsub.f32 %v6070_v43, %v3283_v24  ;;  %v6149_v1 = vsub.f32 %v6068_v49, %v3280_v0  ;;  %3352 = vadd.xlane.f32.xlu0 %v3322_v2 }
 0x484   : > { %v3250_v8 = vpop.xlane.xlu1 %3249 }
 0x485   : > { %v3281_v11 = vmul.f32 0.0078125, %v3250_v8  ;;  %v3323_v7 = vmul.f32 %v6146_v62, %v6146_v62  ;;  %v3320_v59 = vmul.f32 %v6149_v1, %v6149_v1  ;;  %v6203_v8 = vld [vmem:[%s6352_s7] ss:$0 sm:$0xff] }
 0x487   : > { %v6156_v13 = vsub.f32 %v6074_v12, %v3281_v11  ;;  %3354 = vadd.xlane.f32.xlu1 %v3323_v7  ;;  %3348 = vadd.xlane.f32.xlu0 %v3320_v59 }
 0x489   : > { %v3321_v43 = vmul.f32 %v6156_v13, %v6156_v13 }
 0x48b   : > { %3350 = vadd.xlane.f32.xlu1 %v3321_v43 }
 0x48c   : > { %v3260_v49 = vpop.xlane.xlu0 %3259 }
 0x48d   : > { %v3286_v41 = vmul.f32 0.0078125, %v3260_v49 }
 0x48f   : > { %v6161_v33 = vsub.f32 %v6077_v18, %v3286_v41 }
 0x490   : > { %v3262_v48 = vpop.xlane.xlu1 %3261  ;;  %v3256_v3 = vpop.xlane.xlu0 %3255 }
 0x491   : > { %v3287_v6 = vmul.f32 0.0078125, %v3262_v48  ;;  %v3284_v57 = vmul.f32 0.0078125, %v3256_v3  ;;  %v3326_v21 = vmul.f32 %v6161_v33, %v6161_v33 }
 0x493   : > { %v6166_v12 = vsub.f32 %v6082_v36, %v3287_v6  ;;  %v6169_v55 = vsub.f32 %v6080_v5, %v3284_v57  ;;  %3360 = vadd.xlane.f32.xlu0 %v3326_v21  ;;  %v6210_v57 = vld [vmem:[%s6353_s8] ss:$0 sm:$0xff] }
 0x494   : > { %v3258_v61 = vpop.xlane.xlu1 %3257 }
 0x495   : > { %v3285_v63 = vmul.f32 0.0078125, %v3258_v61  ;;  %v3327_v18 = vmul.f32 %v6166_v12, %v6166_v12  ;;  %v3324_v56 = vmul.f32 %v6169_v55, %v6169_v55 }
 0x497   : > { %v6176_v51 = vsub.f32 %v6086_v27, %v3285_v63  ;;  %3362 = vadd.xlane.f32.xlu1 %v3327_v18  ;;  %3356 = vadd.xlane.f32.xlu0 %v3324_v56 }
 0x499   : > { %v3325_v36 = vmul.f32 %v6176_v51, %v6176_v51 }
 0x49b   : > { %3358 = vadd.xlane.f32.xlu1 %v3325_v36 }
 0x49e   : > { %v3264_v5 = vpop.xlane.xlu0 %3263 }
 0x49f   : > { %v3288_v35 = vmul.f32 0.0078125, %v3264_v5 }
 0x4a1   : > { %v6181_v31 = vsub.f32 %v6089_v9, %v3288_v35 }
 0x4a2   : > { %v3266_v16 = vpop.xlane.xlu1 %3265  ;;  %v3268_v4 = vpop.xlane.xlu0 %3267 }
 0x4a3   : > { %v3289_v60 = vmul.f32 0.0078125, %v3266_v16  ;;  %v3290_v38 = vmul.f32 0.0078125, %v3268_v4  ;;  %v3328_v14 = vmul.f32 %v6181_v31, %v6181_v31 }
 0x4a5   : > { %v6186_v27 = vsub.f32 %v6094_v29, %v3289_v60  ;;  %v6189_v45 = vsub.f32 %v6092_v22, %v3290_v38  ;;  %3364 = vadd.xlane.f32.xlu0 %v3328_v14 }
 0x4a6   : > { %v3270_v47 = vpop.xlane.xlu1 %3269 }
 0x4a7   : > { %v3291_v46 = vmul.f32 0.0078125, %v3270_v47  ;;  %v3329_v9 = vmul.f32 %v6186_v27, %v6186_v27  ;;  %v3330_v39 = vmul.f32 %v6189_v45, %v6189_v45 }
 0x4a9   : > { %v6196_v42 = vsub.f32 %v6098_v20, %v3291_v46  ;;  %3366 = vadd.xlane.f32.xlu1 %v3329_v9  ;;  %3368 = vadd.xlane.f32.xlu0 %v3330_v39 }
 0x4ab   : > { %v3331_v29 = vmul.f32 %v6196_v42, %v6196_v42 }
 0x4ad   : > { %3370 = vadd.xlane.f32.xlu1 %v3331_v29 }
 0x4ec   : > { %v3337_v22 = vpop.xlane.xlu0 %3336 }
 0x4ed   : > { %v3374_v17 = vmul.f32 0.0078125, %v3337_v22 }
 0x4ef   : > { %v3394_v10 = vadd.f32 1e-05, %v3374_v17 }
 0x4f0   : > { %v3339_v26 = vpop.xlane.xlu1 %3338  ;;  %v3333_v53 = vpop.xlane.xlu0 %3332 }
 0x4f1   : > { %4920 = vrsqrt.f32 %v3394_v10  ;;  %v3375_v28 = vmul.f32 0.0078125, %v3339_v26  ;;  %v3372_v58 = vmul.f32 0.0078125, %v3333_v53 }
 0x4f3   : > { %v3395_v15 = vadd.f32 1e-05, %v3375_v28  ;;  %v3392_v34 = vadd.f32 1e-05, %v3372_v58 }
 0x4f4   : > { %v3335_v54 = vpop.xlane.xlu1 %3334 }
 0x4f5   : > { %4922 = vrsqrt.f32 %v3395_v15  ;;  %v3373_v20 = vmul.f32 0.0078125, %v3335_v54 }
 0x4f6   : > { %4924 = vrsqrt.f32 %v3392_v34 }
 0x4f7   : > { %v3393_v37 = vadd.f32 1e-05, %v3373_v20 }
 0x4f9   : > { %4926 = vrsqrt.f32 %v3393_v37 }
 0x4fc   : > { %v3345_v24 = vpop.xlane.xlu0 %3344 }
 0x4fd   : > { %v3378_v0 = vmul.f32 0.0078125, %v3345_v24 }
 0x4fe   : > { %v4921_v2 = vpop.eup %4920 }
 0x4ff   : > { %v3434_v11 = vmul.f32 %v4921_v2, %v6101_v52  ;;  %v3398_v7 = vadd.f32 1e-05, %v3378_v0 }
 0x500   : > { %v3347_v59 = vpop.xlane.xlu1 %3346  ;;  %v3341_v43 = vpop.xlane.xlu0 %3340 }
 0x501   : > { %4928 = vrsqrt.f32 %v3398_v7  ;;  %v3379_v49 = vmul.f32 0.0078125, %v3347_v59  ;;  %v3376_v41 = vmul.f32 0.0078125, %v3341_v43  ;;  %v3461_v3 = vmul.f32 %v6203_v8, %v3434_v11 }
 0x502   : > { %v4923_v48 = vpop.eup %4922 }
 0x503   : > { %v4925_v6 = vpop.eup %4924  ;;  %v3435_v21 = vmul.f32 %v4923_v48, %v6109_v30  ;;  %v3399_v61 = vadd.f32 1e-05, %v3379_v49  ;;  %v3396_v63 = vadd.f32 1e-05, %v3376_v41  ;;  %v3488_v35 = vadd.f32 %v6210_v57, %v3461_v3 }
 0x504   : > { %v3432_v52 = vmul.f32 %v4925_v6, %v6104_v19  ;;  %v3343_v18 = vpop.xlane.xlu1 %3342 }
 0x505   : > { %v3462_v56 = vmul.f32 %v6203_v8, %v3435_v21  ;;  %4930 = vrsqrt.f32 %v3399_v61  ;;  %v3377_v36 = vmul.f32 0.0078125, %v3343_v18 }
 0x506   : > { %v4927_v5 = vpop.eup %4926  ;;  %4932 = vrsqrt.f32 %v3396_v63  ;;  %v3459_v4 = vmul.f32 %v6203_v8, %v3432_v52 }
 0x507   : > { %v3489_v16 = vadd.f32 %v6210_v57, %v3462_v56  ;;  %v3433_v30 = vmul.f32 %v4927_v5, %v6112_v44  ;;  %v3397_v60 = vadd.f32 1e-05, %v3377_v36 }
 0x508   : > { %v3486_v19 = vadd.f32 %v6210_v57, %v3459_v4 }
 0x509   : > { %v4050_v38 = vpack.c.bf16 %v3489_v16, %v3488_v35  ;;  %v3460_v14 = vmul.f32 %v6203_v8, %v3433_v30  ;;  %4934 = vrsqrt.f32 %v3397_v60 }
 0x50b   : > { %4092 = vst [vmem:[%s6221_s16 + $0x8] sm:$0xff] %v4050_v38   ;;  %v3487_v47 = vadd.f32 %v6210_v57, %v3460_v14 }
 0x50c   : > { %v3353_v46 = vpop.xlane.xlu0 %3352 }
 0x50d   : > { %v4045_v9 = vpack.c.bf16 %v3487_v47, %v3486_v19  ;;  %v3382_v39 = vmul.f32 0.0078125, %v3353_v46 }
 0x50e   : > { %v4929_v29 = vpop.eup %4928 }
 0x50f   : > { %4046 = vst [vmem:[%s6221_s16] sm:$0xff] %v4045_v9   ;;  %v3438_v44 = vmul.f32 %v4929_v29, %v6121_v25  ;;  %v3402_v22 = vadd.f32 1e-05, %v3382_v39 }
 0x510   : > { %v3355_v17 = vpop.xlane.xlu1 %3354  ;;  %v3349_v10 = vpop.xlane.xlu0 %3348 }
 0x511   : > { %4936 = vrsqrt.f32 %v3402_v22  ;;  %v3383_v26 = vmul.f32 0.0078125, %v3355_v17  ;;  %v3380_v53 = vmul.f32 0.0078125, %v3349_v10  ;;  %v3465_v58 = vmul.f32 %v6203_v8, %v3438_v44 }
 0x512   : > { %v4931_v28 = vpop.eup %4930 }
 0x513   : > { %v4933_v15 = vpop.eup %4932  ;;  %v3439_v34 = vmul.f32 %v4931_v28, %v6126_v40  ;;  %v3403_v54 = vadd.f32 1e-05, %v3383_v26  ;;  %v3400_v20 = vadd.f32 1e-05, %v3380_v53  ;;  %v3492_v11 = vadd.f32 %v6210_v57, %v3465_v58 }
 0x514   : > { %v3436_v37 = vmul.f32 %v4933_v15, %v6129_v23  ;;  %v3351_v24 = vpop.xlane.xlu1 %3350 }
 0x515   : > { %v3466_v25 = vmul.f32 %v6203_v8, %v3439_v34  ;;  %4938 = vrsqrt.f32 %v3403_v54  ;;  %v3381_v0 = vmul.f32 0.0078125, %v3351_v24 }
 0x516   : > { %v4935_v2 = vpop.eup %4934  ;;  %4940 = vrsqrt.f32 %v3400_v20  ;;  %v3463_v59 = vmul.f32 %v6203_v8, %v3436_v37 }
 0x517   : > { %v3493_v7 = vadd.f32 %v6210_v57, %v3466_v25  ;;  %v3437_v40 = vmul.f32 %v4935_v2, %v6136_v32  ;;  %v3401_v43 = vadd.f32 1e-05, %v3381_v0 }
 0x518   : > { %v3490_v41 = vadd.f32 %v6210_v57, %v3463_v59 }
 0x519   : > { %v4060_v49 = vpack.c.bf16 %v3493_v7, %v3492_v11  ;;  %v3464_v23 = vmul.f32 %v6203_v8, %v3437_v40  ;;  %4942 = vrsqrt.f32 %v3401_v43 }
 0x51b   : > { %4094 = vst [vmem:[%s6221_s16 + $0x18] sm:$0xff] %v4060_v49   ;;  %v3491_v48 = vadd.f32 %v6210_v57, %v3464_v23 }
 0x51c   : > { %v3361_v3 = vpop.xlane.xlu0 %3360 }
 0x51d   : > { %v4055_v6 = vpack.c.bf16 %v3491_v48, %v3490_v41  ;;  %v3386_v21 = vmul.f32 0.0078125, %v3361_v3 }
 0x51e   : > { %v4937_v61 = vpop.eup %4936 }
 0x51f   : > { %4093 = vst [vmem:[%s6221_s16 + $0x10] sm:$0xff] %v4055_v6   ;;  %v3442_v63 = vmul.f32 %v4937_v61, %v6141_v50  ;;  %v3406_v52 = vadd.f32 1e-05, %v3386_v21 }
 0x520   : > { %v3363_v18 = vpop.xlane.xlu1 %3362  ;;  %v3357_v32 = vpop.xlane.xlu0 %3356 }
 0x521   : > { %4944 = vrsqrt.f32 %v3406_v52  ;;  %v3387_v56 = vmul.f32 0.0078125, %v3363_v18  ;;  %v3384_v36 = vmul.f32 0.0078125, %v3357_v32  ;;  %v3469_v35 = vmul.f32 %v6203_v8, %v3442_v63 }
 0x522   : > { %v4939_v5 = vpop.eup %4938 }
 0x523   : > { %v4941_v16 = vpop.eup %4940  ;;  %v3443_v4 = vmul.f32 %v4939_v5, %v6146_v62  ;;  %v3407_v30 = vadd.f32 1e-05, %v3387_v56  ;;  %v3404_v60 = vadd.f32 1e-05, %v3384_v36  ;;  %v3496_v46 = vadd.f32 %v6210_v57, %v3469_v35 }
 0x524   : > { %v3440_v38 = vmul.f32 %v4941_v16, %v6149_v1  ;;  %v3359_v14 = vpop.xlane.xlu1 %3358 }
 0x525   : > { %v3470_v50 = vmul.f32 %v6203_v8, %v3443_v4  ;;  %4946 = vrsqrt.f32 %v3407_v30  ;;  %v3385_v19 = vmul.f32 0.0078125, %v3359_v14 }
 0x526   : > { %v4943_v47 = vpop.eup %4942  ;;  %4948 = vrsqrt.f32 %v3404_v60  ;;  %v3467_v39 = vmul.f32 %v6203_v8, %v3440_v38 }
 0x527   : > { %v3497_v9 = vadd.f32 %v6210_v57, %v3470_v50  ;;  %v3441_v62 = vmul.f32 %v4943_v47, %v6156_v13  ;;  %v3405_v29 = vadd.f32 1e-05, %v3385_v19 }
 0x528   : > { %v3494_v22 = vadd.f32 %v6210_v57, %v3467_v39 }
 0x529   : > { %v4070_v44 = vpack.c.bf16 %v3497_v9, %v3496_v46  ;;  %v3468_v1 = vmul.f32 %v6203_v8, %v3441_v62  ;;  %4950 = vrsqrt.f32 %v3405_v29 }
 0x52b   : > { %4096 = vst [vmem:[%s6221_s16 + $0x28] sm:$0xff] %v4070_v44   ;;  %v3495_v17 = vadd.f32 %v6210_v57, %v3468_v1 }
 0x52d   : > { %v4065_v10 = vpack.c.bf16 %v3495_v17, %v3494_v22 }
 0x52e   : > { %v4945_v26 = vpop.eup %4944  ;;  %v3365_v53 = vpop.xlane.xlu0 %3364 }
 0x52f   : > { %4095 = vst [vmem:[%s6221_s16 + $0x20] sm:$0xff] %v4065_v10   ;;  %v3446_v28 = vmul.f32 %v4945_v26, %v6161_v33  ;;  %v3388_v58 = vmul.f32 0.0078125, %v3365_v53 }
 0x531   : > { %v3408_v15 = vadd.f32 1e-05, %v3388_v58  ;;  %v3473_v13 = vmul.f32 %v6203_v8, %v3446_v28 }
 0x532   : > { %v4947_v34 = vpop.eup %4946  ;;  %v3367_v54 = vpop.xlane.xlu1 %3366 }
 0x533   : > { %v3369_v20 = vpop.xlane.xlu0 %3368  ;;  %v4949_v37 = vpop.eup %4948  ;;  %v3447_v24 = vmul.f32 %v4947_v34, %v6166_v12  ;;  %4952 = vrsqrt.f32 %v3408_v15  ;;  %v3389_v25 = vmul.f32 0.0078125, %v3367_v54  ;;  %v3500_v59 = vadd.f32 %v6210_v57, %v3473_v13 }
 0x534   : > { %v3444_v0 = vmul.f32 %v4949_v37, %v6169_v55  ;;  %v3390_v2 = vmul.f32 0.0078125, %v3369_v20 }
 0x535   : > { %v3474_v11 = vmul.f32 %v6203_v8, %v3447_v24  ;;  %v3409_v7 = vadd.f32 1e-05, %v3389_v25 }
 0x536   : > { %v4951_v33 = vpop.eup %4950  ;;  %v3471_v40 = vmul.f32 %v6203_v8, %v3444_v0  ;;  %v3410_v43 = vadd.f32 1e-05, %v3390_v2  ;;  %v3371_v49 = vpop.xlane.xlu1 %3370 }
 0x537   : > { %v3501_v23 = vadd.f32 %v6210_v57, %v3474_v11  ;;  %v3445_v12 = vmul.f32 %v4951_v33, %v6176_v51  ;;  %4954 = vrsqrt.f32 %v3409_v7  ;;  %v3391_v41 = vmul.f32 0.0078125, %v3371_v49 }
 0x538   : > { %4956 = vrsqrt.f32 %v3410_v43  ;;  %v3498_v6 = vadd.f32 %v6210_v57, %v3471_v40 }
 0x539   : > { %v4080_v55 = vpack.c.bf16 %v3501_v23, %v3500_v59  ;;  %v3472_v48 = vmul.f32 %v6203_v8, %v3445_v12  ;;  %v3411_v3 = vadd.f32 1e-05, %v3391_v41 }
 0x53b   : > { %4098 = vst [vmem:[%s6221_s16 + $0x38] sm:$0xff] %v4080_v55   ;;  %v3499_v21 = vadd.f32 %v6210_v57, %v3472_v48  ;;  %4958 = vrsqrt.f32 %v3411_v3 }
 0x53d   : > { %v4075_v61 = vpack.c.bf16 %v3499_v21, %v3498_v6 }
 0x53f   : > { %4097 = vst [vmem:[%s6221_s16 + $0x30] sm:$0xff] %v4075_v61  }
 0x540   : > { %v4953_v63 = vpop.eup %4952 }
 0x541   : > { %v3448_v52 = vmul.f32 %v4953_v63, %v6181_v31 }
 0x543   : > { %v3475_v32 = vmul.f32 %v6203_v8, %v3448_v52 }
 0x544   : > { %v4955_v51 = vpop.eup %4954 }
 0x545   : > { %v4957_v18 = vpop.eup %4956  ;;  %v3449_v56 = vmul.f32 %v4955_v51, %v6186_v27  ;;  %v3502_v16 = vadd.f32 %v6210_v57, %v3475_v32 }
 0x546   : > { %v3450_v36 = vmul.f32 %v4957_v18, %v6189_v45 }
 0x547   : > { %v3476_v5 = vmul.f32 %v6203_v8, %v3449_v56 }
 0x548   : > { %v4959_v35 = vpop.eup %4958  ;;  %v3477_v30 = vmul.f32 %v6203_v8, %v3450_v36 }
 0x549   : > { %v3503_v4 = vadd.f32 %v6210_v57, %v3476_v5  ;;  %v3451_v31 = vmul.f32 %v4959_v35, %v6196_v42 }
 0x54a   : > { %v3504_v14 = vadd.f32 %v6210_v57, %v3477_v30 }
 0x54b   : > { %v4085_v60 = vpack.c.bf16 %v3503_v4, %v3502_v16  ;;  %v3478_v38 = vmul.f32 %v6203_v8, %v3451_v31 }
 0x54d   : > { %4099 = vst [vmem:[%s6221_s16 + $0x40] sm:$0xff] %v4085_v60   ;;  %v3505_v27 = vadd.f32 %v6210_v57, %v3478_v38  ;;  %3613 = sbr.rel (!%p6391_p12) target bundleno = 1389 (0x56d), region = 80 }
 0x54f   : > { %v4090_v45 = vpack.c.bf16 %v3505_v27, %v3504_v14 }
 0x551   : > { %4100 = vst [vmem:[%s6221_s16 + $0x48] sm:$0xff] %v4090_v45  }
 0x552   : > { %s6401_s27 = smov (!%p3616_p4, %s3615_s27), 20 }
 0x553   : > { %s6287_s19 = sshll.u32 %s6401_s27, 6 }
 0x554   : > { %s3620_s20 = ssub.s32 1280, %s6287_s19 }
 0x555   : > { %3621 = vsyncadd %s3607_s26, %s3620_s20  ;;  %p4015_p6 = scmp.ne.s32.totalorder %s6287_s19, 0  ;;  %s4041_s21 = smul.u32 1280, %s5251_s13 }
 0x556   : > { %s3626_s23 = sshll.u32 %s6221_s16, 4  ;;  %s5177_s14 = smov [#allocation11]   ;;  %s6300_s23 = int_to_ptr.vmem [resolvable:$true] %s3626_s23 }
 0x557   : > { %s6298_s25 = scalar_lea.hbm %s6354_s9, %s4041_s21  ;;  %s5092_s15 = scalar_lea.vmem %s6300_s23, %s6287_s19 }
 0x558   : > { %p5093_p8 = scmp.ne.s32.totalorder %s6300_s23, %s5092_s15  ;;  %s5096_s1 = sshll.u32 %s5177_s14, 4  ;;  %s5097_s1 = int_to_ptr.vmem [resolvable:$false] %s5096_s1 }
 0x559   : > { %s5098_s13 = scalar_lea.vmem %s5097_s1, 2560  ;;  %p5099_p0 = scmp.lt.s32.totalorder %s6300_s23, %s5097_s1 }
 0x55a   : > { %p5094_p13 = pnand %p5093_p8, %p4015_p6  ;;  %p5100_p10 = scmp.lt.s32.totalorder %s5098_s13, %s5092_s15 }
 0x55c   : > { %p5095_p2 = pneg %p5094_p13  ;;  %p5101_p1 = por %p5100_p10, %p5099_p0 }
 0x55e   : > { %p5102_p5 = pnand %p5101_p1, %p5095_p2 }
 0x560   : > { %5105 = shalt.err (!%p5102_p5)
}
 0x561   : > { %s5106_s17 = scalar_lea.hbm %s6298_s25, %s6287_s19  ;;  %s5110_s27 = scalar_lea.hbm %s6354_s9, 2432 }
 0x562   : > { %p5107_p3 = scmp.ne.s32.totalorder %s6298_s25, %s5106_s17  ;;  %p5111_p12 = scmp.lt.s32.totalorder %s6298_s25, %s6354_s9 }
 0x563   : > { %p5112_p4 = scmp.lt.s32.totalorder %s5110_s27, %s5106_s17 }
 0x564   : > { %p5108_p7 = pnand %p5107_p3, %p4015_p6 }
 0x565   : > { %p5113_p8 = por %p5112_p4, %p5111_p12 }
 0x566   : > { %p5109_p9 = pneg %p5108_p7 }
 0x568   : > { %p5114_p13 = pnand %p5113_p8, %p5109_p9 }
 0x56a   : > { %5117 = shalt.err (!%p5114_p13)
}
 0x56b   : > { %s5178_s28 = smov 64   ;;  %s5179_s29 = smov 4  }
 0x56c   : > { %3632 = dma.vmem_to_hbm [thread:$0]  (%p4015_p6), %s6300_s23, %s6287_s19, %s6298_s25, %s3607_s26, %s5178_s28, %s5178_s28, %s5179_s29  }
 0x56d PF: > { %s3641_s15 = sand.u32 1, %s5152_s30   ;;  %p6392_p2 = scmp.ne.s32.totalorder %s6367_s22, 0 }
 0x56e   : > { %s3642_s14 = scalar_lea.sflag [#allocation4], %s3641_s15 }
 0x56f   : > { %p4549_p0 = pnand %p3743_p11, %p6392_p2 }
 0x571   : > { %p4550_p10 = pneg %p4549_p0 }
 0x573   : > { %5147 = dma.done.wait (%p4550_p10), %s3642_s14, 1280  }
 0x574   : > { %5149 = vsyncadd (%p4550_p10), %s3642_s14, 4294966016  ;;  %s6393_s12 = sld [smem:[#allocation16_spill]]  ;;  %s6395_s30 = smov %s5156_s10 }
 0x575   : > { %s6394_s1 = sld [smem:[#allocation17_spill]]  ;;  %s6396_s10 = smov %s5160_s11 }
 0x57a   : > { %p24_p1 = scmp.ge.s32.totalorder %s6393_s12, 4  }
 0x57b   : > { %s6397_s11 = smov %s6394_s1 }
 0x57c   :  { %26 = sbr.rel (!%p24_p1) target bundleno = 9 (0x9), region = 117 }
 0x581   :  { %3647 = vsyncpa [#allocation3], 1 }
 0x582   :  { %3649 = vsyncpa [#allocation3 + $0x1], 1 }
 0x583   :  { %3650 = vsyncpa [#allocation6], 1 }
 0x584   :  { %3651 = vsyncpa [#allocation9], 1 }
 0x585   :  { %3652 = vsyncpa [#allocation4], 1 }
 0x586   :  { %3654 = vsyncpa [#allocation4 + $0x1], 1 }

</bundles_post_ra>
